<compile_context>
chip_gen: v7x
topology: tpu7x:2x2x1
jax: 0.10.0
libtpu: 0.0.40
codegen_flags: <defaults>
</compile_context>

<pallas_src>
import numpy as np

import jax
import jax.numpy as jnp
from jax import lax
from jax.experimental import pallas as pl
from jax.experimental.pallas import tpu as pltpu


# ----------------------------------------------------------------------------
# Fully fused bottleneck kernel (NB images per grid step)
# ----------------------------------------------------------------------------
def _make_bottleneck_kernel(H, W, planes, cin, cout, stride, has_proj, nb):
    HW = H * W
    L = nb * HW
    hw_pow2 = (HW & (HW - 1)) == 0
    w_pow2 = (W & (W - 1)) == 0

    def kernel(*refs):
        if has_proj and stride > 1:
            (x_ref, w1_ref, b1_ref, w2_ref, b2_ref, w3_ref, b3_ref,
             wsc_ref, bsc_ref, xsc_ref, sel_ref, o_ref) = refs
        elif has_proj:
            (x_ref, w1_ref, b1_ref, w2_ref, b2_ref, w3_ref, b3_ref,
             wsc_ref, bsc_ref, o_ref) = refs
            xsc_ref = sel_ref = None
        else:
            (x_ref, w1_ref, b1_ref, w2_ref, b2_ref, w3_ref, b3_ref,
             o_ref) = refs
            wsc_ref = bsc_ref = xsc_ref = sel_ref = None

        xb = x_ref[...]                                    # (Cin, NB*HW) bf16

        # ---- conv1 (1x1) + bn1 (folded) + ReLU ------------------------------
        a1 = jnp.dot(w1_ref[...], xb, preferred_element_type=jnp.float32)
        a1 = jnp.maximum(a1 + b1_ref[...], 0.0)            # (P, L) f32

        # ---- per-image boundary masks, hoisted out of the tap loop ----------
        r = lax.broadcasted_iota(jnp.int32, (1, L), 1)      # flat lane index
        p = jnp.bitwise_and(r, HW - 1) if hw_pow2 else lax.rem(r, HW)
        j = jnp.bitwise_and(p, W - 1) if w_pow2 else lax.rem(p, W)
        row_ok = {-1: p >= W, 0: None, 1: p < (H - 1) * W}
        col_ok = {-1: j >= 1, 0: None, 1: j < (W - 1)}

        # ---- conv2 (3x3, pad=1): stack 9 rolled taps along K, one matmul ----
        taps = []
        for dh in (-1, 0, 1):
            for dw in (-1, 0, 1):
                shift = dh * W + dw                        # tap reads a1[:, r+shift]
                t = a1 if shift == 0 else pltpu.roll(a1, (-shift) % L, axis=1)
                rm, cm = row_ok[dh], col_ok[dw]
                m = rm if cm is None else (cm if rm is None else rm & cm)
                if m is not None:
                    t = jnp.where(m, t, 0.0)
                taps.append(t)
        tap_mat = jnp.concatenate(taps, axis=0).astype(jnp.bfloat16)  # (9P, L)

        acc2 = jnp.dot(w2_ref[...], tap_mat,
                       preferred_element_type=jnp.float32)            # (P, L)
        # bias + ReLU in f32 BEFORE any downcast / stride selection
        a2 = jnp.maximum(acc2 + b2_ref[...], 0.0)
        a2b = a2.astype(jnp.bfloat16)
        if stride > 1:
            # 0/1 block-diagonal selection of the strided columns; picks of
            # bf16 values are exact in f32 and exact again after the re-cast.
            a2b = jnp.dot(a2b, sel_ref[...],
                          preferred_element_type=jnp.float32
                          ).astype(jnp.bfloat16)                      # (P, NB*HoWo)

        # ---- conv3 (1x1) + bn3 + shortcut + ReLU (single epilogue) ----------
        out = jnp.dot(w3_ref[...], a2b,
                      preferred_element_type=jnp.float32) + b3_ref[...]
        if has_proj:
            xs = xsc_ref[...] if stride > 1 else xb        # host-strided bf16
            out = out + jnp.dot(wsc_ref[...], xs,
                                preferred_element_type=jnp.float32) + bsc_ref[...]
        else:
            out = out + xb.astype(jnp.float32)             # identity shortcut
        o_ref[...] = jnp.maximum(out, 0.0).astype(o_ref.dtype)

    return kernel


# ----------------------------------------------------------------------------
# Host-side helpers
# ----------------------------------------------------------------------------
def _make_block_stride_select(H, W, stride, nb, dtype=jnp.bfloat16):
    """Block-diagonal (NB*HW, NB*Ho*Wo) 0/1 selector for the in-block images."""
    Ho = (H - 1) // stride + 1
    Wo = (W - 1) // stride + 1
    HW, HWo = H * W, Ho * Wo
    q = np.arange(HWo)
    src = (q // Wo) * stride * W + (q % Wo) * stride
    sel = np.zeros((nb * HW, nb * HWo), np.float32)
    for b in range(nb):
        sel[b * HW + src, b * HWo + q] = 1.0
    return jnp.asarray(sel, dtype)


def bottleneck_forward(x_nchw, kp, stride, nb=4):
    """x_nchw: (N, Cin, H, W) f32; kp: prepared params; returns (N,Cout,Ho,Wo) f32."""
    N, cin, H, W = x_nchw.shape
    planes = kp["w1"].shape[0]
    cout = kp["w3"].shape[0]
    has_proj = "w_sc" in kp
    if not has_proj:
        assert stride == 1 and cin == cout, (
            "identity shortcut requires stride == 1 and in_planes == 4*planes")
    Ho = (H - 1) // stride + 1
    Wo = (W - 1) // stride + 1
    HW, HWo = H * W, Ho * Wo

    nb = max(1, min(nb, N))
    G = -(-N // nb)
    Npad = G * nb
    xp = x_nchw if Npad == N else jnp.pad(
        x_nchw, ((0, Npad - N), (0, 0), (0, 0), (0, 0)))

    # lane-dense blocks need >=128 lanes per step at these shapes
    assert (nb * HW) % 128 == 0 and (nb * HWo) % 128 == 0, "pick nb so blocks are lane-aligned"

    # Lane-dense bf16 activation slab: (Cin, N*HW), flat lane = n*HW + i*W + j.
    x_slab = jnp.transpose(xp.astype(jnp.bfloat16),
                           (1, 0, 2, 3)).reshape(cin, Npad * HW)

    def resident(arr):   # full-array block, constant index_map -> VMEM-resident
        nd = arr.ndim
        return pl.BlockSpec(arr.shape, lambda g, _nd=nd: (0,) * _nd)

    args = [x_slab, kp["w1"], kp["b1"], kp["w2"], kp["b2"], kp["w3"], kp["b3"]]
    in_specs = [pl.BlockSpec((cin, nb * HW), lambda g: (0, g))]
    in_specs += [resident(a) for a in args[1:]]
    if has_proj:
        args += [kp["w_sc"], kp["b_sc"]]
        in_specs += [resident(kp["w_sc"]), resident(kp["b_sc"])]
    if stride > 1:
        # shortcut's strided input sliced on the host (cheap HBM slice),
        # avoiding the larger of the two in-kernel selection matmuls
        xsc = jnp.transpose(xp[:, :, ::stride, ::stride].astype(jnp.bfloat16),
                            (1, 0, 2, 3)).reshape(cin, Npad * HWo)
        sel = _make_block_stride_select(H, W, stride, nb)
        args += [xsc, sel]
        in_specs += [pl.BlockSpec((cin, nb * HWo), lambda g: (0, g)),
                     resident(sel)]

    out = pl.pallas_call(
        _make_bottleneck_kernel(H, W, planes, cin, cout, stride, has_proj, nb),
        out_shape=jax.ShapeDtypeStruct((cout, Npad * HWo), jnp.bfloat16),
        grid=(G,),
        in_specs=in_specs,
        out_specs=pl.BlockSpec((cout, nb * HWo), lambda g: (0, g)),
        compiler_params=pltpu.CompilerParams(
            dimension_semantics=("parallel",),   # shard batch-blocks across TCs
            vmem_limit_bytes=32 * 1024 * 1024),
    )(*args)

    # layout plumbing back to NCHW f32 (a chained network would keep bf16)
    out = out.astype(jnp.float32).reshape(cout, Npad, Ho, Wo)
    return jnp.transpose(out, (1, 0, 2, 3))[:N]


# ----------------------------------------------------------------------------
# Parameter construction / BN folding (eval-mode running stats)
# ----------------------------------------------------------------------------
def fold_bn(gamma, beta, mean, var, eps=1e-5):
    scale = gamma / jnp.sqrt(var + eps)
    return scale, beta - mean * scale


def prepare_kernel_params(raw):
    """Fold BN scale into conv weights, lay out as (C_out, C_in) /
    (C_out, 9*C_in) bf16 matrices plus f32 per-channel biases."""
    def fold_1x1(w_hwio, bn):
        scale, bias = fold_bn(*bn)
        ci, co = w_hwio.shape[2], w_hwio.shape[3]
        wt = (w_hwio.reshape(ci, co) * scale[None, :]).T          # (co, ci)
        return wt.astype(jnp.bfloat16), bias.reshape(-1, 1).astype(jnp.float32)

    p = {}
    p["w1"], p["b1"] = fold_1x1(raw["w1"], raw["bn1"])
    s2, b2 = fold_bn(*raw["bn2"])
    w2 = raw["w2"] * s2[None, None, None, :]                       # (3,3,I,O)
    O = w2.shape[3]
    # rows: out channel; cols: (kh*3+kw)*I + i  -> matches the tap stacking
    p["w2"] = jnp.transpose(w2, (3, 0, 1, 2)).reshape(O, -1).astype(jnp.bfloat16)
    p["b2"] = b2.reshape(-1, 1).astype(jnp.float32)
    p["w3"], p["b3"] = fold_1x1(raw["w3"], raw["bn3"])
    if "w_sc" in raw:
        p["w_sc"], p["b_sc"] = fold_1x1(raw["w_sc"], raw["bn_sc"])
    return p


def make_raw_params(key, in_planes, planes, stride):
    expansion = 4
    out_planes = expansion * planes
    keys = iter(jax.random.split(key, 8))

    def conv_w(k_, kh, kw, ci, co):
        return jax.random.normal(k_, (kh, kw, ci, co), jnp.float32) * 0.1

    def bn_p(k_, c):
        ks = jax.random.split(k_, 4)
        return (jax.random.uniform(ks[0], (c,), jnp.float32, 0.5, 1.5),
                jax.random.normal(ks[1], (c,), jnp.float32) * 0.1,
                jax.random.normal(ks[2], (c,), jnp.float32) * 0.1,
                jax.random.uniform(ks[3], (c,), jnp.float32, 0.5, 1.5))

    raw = {"w1": conv_w(next(keys), 1, 1, in_planes, planes),
           "bn1": bn_p(next(keys), planes),
           "w2": conv_w(next(keys), 3, 3, planes, planes),
           "bn2": bn_p(next(keys), planes),
           "w3": conv_w(next(keys), 1, 1, planes, out_planes),
           "bn3": bn_p(next(keys), out_planes)}
    if stride != 1 or in_planes != out_planes:
        raw["w_sc"] = conv_w(next(keys), 1, 1, in_planes, out_planes)
        raw["bn_sc"] = bn_p(next(keys), out_planes)
    return raw


# ----------------------------------------------------------------------------
# Pure-JAX reference (NCHW, eval-mode BN)
# ----------------------------------------------------------------------------
def ref_forward(x_nchw, raw, stride):
    dn = ("NCHW", "HWIO", "NCHW")

    def conv(x_, w, s, pad):
        return lax.conv_general_dilated(x_, w, (s, s), pad,
                                        dimension_numbers=dn)

    def bn(x_, p):
        g, b, m, v = (t.reshape(1, -1, 1, 1) for t in p)
        return (x_ - m) / jnp.sqrt(v + 1e-5) * g + b

    out = jax.nn.relu(bn(conv(x_nchw, raw["w1"], 1, "VALID"), raw["bn1"]))
    out = jax.nn.relu(bn(conv(out, raw["w2"], stride, ((1, 1), (1, 1))),
                         raw["bn2"]))
    out = bn(conv(out, raw["w3"], 1, "VALID"), raw["bn3"])
    if "w_sc" in raw:
        sc = bn(conv(x_nchw, raw["w_sc"], stride, "VALID"), raw["bn_sc"])
    else:
        sc = x_nchw
    return jax.nn.relu(out + sc)


def _check(out, ref, name, tol=2e-2):
    # tolerance sized for bf16 activations / weights with f32 accumulation
    err = float(jnp.max(jnp.abs(out - ref))) / (1.0 + float(jnp.max(jnp.abs(ref))))
    assert err < tol, f"{name} mismatch: rel_err={err:.3e}"


# ----------------------------------------------------------------------------
if __name__ == "__main__":
    key = jax.random.PRNGKey(0)
    k1, k2, k3, k4, k5, k6 = jax.random.split(key, 6)

    N, H, W, NB = 8, 16, 16, 4   # grid length 2 (even -> balanced on v7x)

    # --- case 1: projection shortcut, stride=2 -------------------------------
    in_planes, planes, stride = 16, 8, 2
    x = jax.random.normal(k1, (N, in_planes, H, W), jnp.float32)
    raw = make_raw_params(k2, in_planes, planes, stride)
    kp = prepare_kernel_params(raw)
    out = jax.block_until_ready(bottleneck_forward(x, kp, stride, nb=NB))
    assert out.shape == (N, 4 * planes, H // stride, W // stride)
    _check(out, ref_forward(x, raw, stride), "projection stride=2 path")

    # --- case 2: identity shortcut (stride=1, in_planes == 4*planes) ---------
    in_planes2, planes2, stride2 = 32, 8, 1
    x2 = jax.random.normal(k3, (N, in_planes2, H, W), jnp.float32)
    raw2 = make_raw_params(k4, in_planes2, planes2, stride2)
    kp2 = prepare_kernel_params(raw2)
    out2 = jax.block_until_ready(bottleneck_forward(x2, kp2, stride2, nb=NB))
    assert out2.shape == (N, 4 * planes2, H, W)
    _check(out2, ref_forward(x2, raw2, stride2), "identity path")

    # --- case 3: projection shortcut, stride=1 (channel-expansion only) ------
    in_planes3, planes3, stride3 = 16, 8, 1
    x3 = jax.random.normal(k5, (N, in_planes3, H, W), jnp.float32)
    raw3 = make_raw_params(k6, in_planes3, planes3, stride3)
    kp3 = prepare_kernel_params(raw3)
    out3 = jax.block_until_ready(bottleneck_forward(x3, kp3, stride3, nb=NB))
    assert out3.shape == (N, 4 * planes3, H, W)
    _check(out3, ref_forward(x3, raw3, stride3), "projection stride=1 path")

    print("KERNEL_OK")
</pallas_src>

<mosaic_0001>
module attributes {stable_mosaic.version = 11 : i64} {
  func.func @kernel(%arg0: i32, %arg1: memref<16x1024xbf16, #tpu.memory_space<vmem>>, %arg2: memref<8x16xbf16, #tpu.memory_space<vmem>>, %arg3: memref<8x1xf32, #tpu.memory_space<vmem>>, %arg4: memref<8x72xbf16, #tpu.memory_space<vmem>>, %arg5: memref<8x1xf32, #tpu.memory_space<vmem>>, %arg6: memref<32x8xbf16, #tpu.memory_space<vmem>>, %arg7: memref<32x1xf32, #tpu.memory_space<vmem>>, %arg8: memref<32x16xbf16, #tpu.memory_space<vmem>>, %arg9: memref<32x1xf32, #tpu.memory_space<vmem>>, %arg10: memref<16x256xbf16, #tpu.memory_space<vmem>>, %arg11: memref<1024x256xbf16, #tpu.memory_space<vmem>>, %arg12: memref<32x256xbf16, #tpu.memory_space<vmem>>) attributes {dimension_semantics = [#tpu.dimension_semantics<parallel>], iteration_bounds = array<i64: 2>, scalar_prefetch = 0 : i64, scratch_operands = 0 : i64, tpu.core_type = #tpu.core_type<tc>, window_params = [{transform_indices = @transform_0, window_bounds = array<i64: 16, 1024>}, {pipeline_mode = #tpu.pipeline_mode<synchronous>, transform_indices = @transform_1, window_bounds = array<i64: 8, 16>}, {pipeline_mode = #tpu.pipeline_mode<synchronous>, transform_indices = @transform_2, window_bounds = array<i64: 8, 1>}, {pipeline_mode = #tpu.pipeline_mode<synchronous>, transform_indices = @transform_3, window_bounds = array<i64: 8, 72>}, {pipeline_mode = #tpu.pipeline_mode<synchronous>, transform_indices = @transform_4, window_bounds = array<i64: 8, 1>}, {pipeline_mode = #tpu.pipeline_mode<synchronous>, transform_indices = @transform_5, window_bounds = array<i64: 32, 8>}, {pipeline_mode = #tpu.pipeline_mode<synchronous>, transform_indices = @transform_6, window_bounds = array<i64: 32, 1>}, {pipeline_mode = #tpu.pipeline_mode<synchronous>, transform_indices = @transform_7, window_bounds = array<i64: 32, 16>}, {pipeline_mode = #tpu.pipeline_mode<synchronous>, transform_indices = @transform_8, window_bounds = array<i64: 32, 1>}, {transform_indices = @transform_9, window_bounds = array<i64: 16, 256>}, {pipeline_mode = #tpu.pipeline_mode<synchronous>, transform_indices = @transform_10, window_bounds = array<i64: 1024, 256>}, {transform_indices = @transform_11, window_bounds = array<i64: 32, 256>}]} {
    %c0 = arith.constant 0 : index
    %c0_0 = arith.constant 0 : index
    %0 = vector.load %arg1[%c0, %c0_0] : memref<16x1024xbf16, #tpu.memory_space<vmem>>, vector<16x1024xbf16>
    %c0_1 = arith.constant 0 : index
    %c0_2 = arith.constant 0 : index
    %1 = vector.load %arg2[%c0_1, %c0_2] : memref<8x16xbf16, #tpu.memory_space<vmem>>, vector<8x16xbf16>
    %cst = arith.constant dense<0.000000e+00> : vector<8x1024xf32>
    %2 = tpu.matmul %1, %0, %cst {dimension_numbers = #tpu.dot_dimension_numbers<[1], [0], [0], [1], [0, 0, 1, 1], [], []>} : vector<8x16xbf16>, vector<16x1024xbf16>, vector<8x1024xf32> -> vector<8x1024xf32>
    %c0_3 = arith.constant 0 : index
    %c0_4 = arith.constant 0 : index
    %3 = vector.load %arg3[%c0_3, %c0_4] : memref<8x1xf32, #tpu.memory_space<vmem>>, vector<8x1xf32>
    %4 = vector.broadcast %3 : vector<8x1xf32> to vector<8x1024xf32>
    %5 = arith.addf %2, %4 : vector<8x1024xf32>
    %cst_5 = arith.constant 0.000000e+00 : f32
    %6 = vector.broadcast %cst_5 : f32 to vector<8x1024xf32>
    %7 = arith.maximumf %5, %6 : vector<8x1024xf32>
    %8 = tpu.iota {dimensions = array<i32: 1>} : vector<1x1024xi32>
    %c255_i32 = arith.constant 255 : i32
    %9 = vector.broadcast %c255_i32 : i32 to vector<1x1024xi32>
    %10 = arith.andi %8, %9 : vector<1x1024xi32>
    %c15_i32 = arith.constant 15 : i32
    %11 = vector.broadcast %c15_i32 : i32 to vector<1x1024xi32>
    %12 = arith.andi %10, %11 : vector<1x1024xi32>
    %c16_i32 = arith.constant 16 : i32
    %13 = vector.broadcast %c16_i32 : i32 to vector<1x1024xi32>
    %14 = arith.cmpi sge, %10, %13 : vector<1x1024xi32>
    %c240_i32 = arith.constant 240 : i32
    %15 = vector.broadcast %c240_i32 : i32 to vector<1x1024xi32>
    %16 = arith.cmpi slt, %10, %15 : vector<1x1024xi32>
    %c1_i32 = arith.constant 1 : i32
    %17 = vector.broadcast %c1_i32 : i32 to vector<1x1024xi32>
    %18 = arith.cmpi sge, %12, %17 : vector<1x1024xi32>
    %c15_i32_6 = arith.constant 15 : i32
    %19 = vector.broadcast %c15_i32_6 : i32 to vector<1x1024xi32>
    %20 = arith.cmpi slt, %12, %19 : vector<1x1024xi32>
    %c17_i32 = arith.constant 17 : i32
    %21 = tpu.dynamic_rotate %7 by %c17_i32 dim 1 : vector<8x1024xf32>, i32 -> vector<8x1024xf32>
    %22 = arith.andi %14, %18 : vector<1x1024xi1>
    %cst_7 = arith.constant 0.000000e+00 : f32
    %23 = vector.shape_cast %22 : vector<1x1024xi1> to vector<1x1024xi1>
    %24 = vector.broadcast %23 : vector<1x1024xi1> to vector<8x1024xi1>
    %25 = vector.broadcast %cst_7 : f32 to vector<8x1024xf32>
    %26 = arith.select %24, %21, %25 : vector<8x1024xi1>, vector<8x1024xf32>
    %c16_i32_8 = arith.constant 16 : i32
    %27 = tpu.dynamic_rotate %7 by %c16_i32_8 dim 1 : vector<8x1024xf32>, i32 -> vector<8x1024xf32>
    %cst_9 = arith.constant 0.000000e+00 : f32
    %28 = vector.shape_cast %14 : vector<1x1024xi1> to vector<1x1024xi1>
    %29 = vector.broadcast %28 : vector<1x1024xi1> to vector<8x1024xi1>
    %30 = vector.broadcast %cst_9 : f32 to vector<8x1024xf32>
    %31 = arith.select %29, %27, %30 : vector<8x1024xi1>, vector<8x1024xf32>
    %c15_i32_10 = arith.constant 15 : i32
    %32 = tpu.dynamic_rotate %7 by %c15_i32_10 dim 1 : vector<8x1024xf32>, i32 -> vector<8x1024xf32>
    %33 = arith.andi %14, %20 : vector<1x1024xi1>
    %cst_11 = arith.constant 0.000000e+00 : f32
    %34 = vector.shape_cast %33 : vector<1x1024xi1> to vector<1x1024xi1>
    %35 = vector.broadcast %34 : vector<1x1024xi1> to vector<8x1024xi1>
    %36 = vector.broadcast %cst_11 : f32 to vector<8x1024xf32>
    %37 = arith.select %35, %32, %36 : vector<8x1024xi1>, vector<8x1024xf32>
    %c1_i32_12 = arith.constant 1 : i32
    %38 = tpu.dynamic_rotate %7 by %c1_i32_12 dim 1 : vector<8x1024xf32>, i32 -> vector<8x1024xf32>
    %cst_13 = arith.constant 0.000000e+00 : f32
    %39 = vector.shape_cast %18 : vector<1x1024xi1> to vector<1x1024xi1>
    %40 = vector.broadcast %39 : vector<1x1024xi1> to vector<8x1024xi1>
    %41 = vector.broadcast %cst_13 : f32 to vector<8x1024xf32>
    %42 = arith.select %40, %38, %41 : vector<8x1024xi1>, vector<8x1024xf32>
    %c1023_i32 = arith.constant 1023 : i32
    %43 = tpu.dynamic_rotate %7 by %c1023_i32 dim 1 : vector<8x1024xf32>, i32 -> vector<8x1024xf32>
    %cst_14 = arith.constant 0.000000e+00 : f32
    %44 = vector.shape_cast %20 : vector<1x1024xi1> to vector<1x1024xi1>
    %45 = vector.broadcast %44 : vector<1x1024xi1> to vector<8x1024xi1>
    %46 = vector.broadcast %cst_14 : f32 to vector<8x1024xf32>
    %47 = arith.select %45, %43, %46 : vector<8x1024xi1>, vector<8x1024xf32>
    %c1009_i32 = arith.constant 1009 : i32
    %48 = tpu.dynamic_rotate %7 by %c1009_i32 dim 1 : vector<8x1024xf32>, i32 -> vector<8x1024xf32>
    %49 = arith.andi %16, %18 : vector<1x1024xi1>
    %cst_15 = arith.constant 0.000000e+00 : f32
    %50 = vector.shape_cast %49 : vector<1x1024xi1> to vector<1x1024xi1>
    %51 = vector.broadcast %50 : vector<1x1024xi1> to vector<8x1024xi1>
    %52 = vector.broadcast %cst_15 : f32 to vector<8x1024xf32>
    %53 = arith.select %51, %48, %52 : vector<8x1024xi1>, vector<8x1024xf32>
    %c1008_i32 = arith.constant 1008 : i32
    %54 = tpu.dynamic_rotate %7 by %c1008_i32 dim 1 : vector<8x1024xf32>, i32 -> vector<8x1024xf32>
    %cst_16 = arith.constant 0.000000e+00 : f32
    %55 = vector.shape_cast %16 : vector<1x1024xi1> to vector<1x1024xi1>
    %56 = vector.broadcast %55 : vector<1x1024xi1> to vector<8x1024xi1>
    %57 = vector.broadcast %cst_16 : f32 to vector<8x1024xf32>
    %58 = arith.select %56, %54, %57 : vector<8x1024xi1>, vector<8x1024xf32>
    %c1007_i32 = arith.constant 1007 : i32
    %59 = tpu.dynamic_rotate %7 by %c1007_i32 dim 1 : vector<8x1024xf32>, i32 -> vector<8x1024xf32>
    %60 = arith.andi %16, %20 : vector<1x1024xi1>
    %cst_17 = arith.constant 0.000000e+00 : f32
    %61 = vector.shape_cast %60 : vector<1x1024xi1> to vector<1x1024xi1>
    %62 = vector.broadcast %61 : vector<1x1024xi1> to vector<8x1024xi1>
    %63 = vector.broadcast %cst_17 : f32 to vector<8x1024xf32>
    %64 = arith.select %62, %59, %63 : vector<8x1024xi1>, vector<8x1024xf32>
    %65 = tpu.concatenate %26, %31, %37, %42, %7, %47, %53, %58, %64 in 0 : vector<8x1024xf32>, vector<8x1024xf32>, vector<8x1024xf32>, vector<8x1024xf32>, vector<8x1024xf32>, vector<8x1024xf32>, vector<8x1024xf32>, vector<8x1024xf32>, vector<8x1024xf32> -> vector<72x1024xf32>
    %66 = arith.truncf %65 : vector<72x1024xf32> to vector<72x1024xbf16>
    %c0_18 = arith.constant 0 : index
    %c0_19 = arith.constant 0 : index
    %67 = vector.load %arg4[%c0_18, %c0_19] : memref<8x72xbf16, #tpu.memory_space<vmem>>, vector<8x72xbf16>
    %cst_20 = arith.constant dense<0.000000e+00> : vector<8x1024xf32>
    %68 = tpu.matmul %67, %66, %cst_20 {dimension_numbers = #tpu.dot_dimension_numbers<[1], [0], [0], [1], [0, 0, 1, 1], [], []>} : vector<8x72xbf16>, vector<72x1024xbf16>, vector<8x1024xf32> -> vector<8x1024xf32>
    %c0_21 = arith.constant 0 : index
    %c0_22 = arith.constant 0 : index
    %69 = vector.load %arg5[%c0_21, %c0_22] : memref<8x1xf32, #tpu.memory_space<vmem>>, vector<8x1xf32>
    %70 = vector.broadcast %69 : vector<8x1xf32> to vector<8x1024xf32>
    %71 = arith.addf %68, %70 : vector<8x1024xf32>
    %cst_23 = arith.constant 0.000000e+00 : f32
    %72 = vector.broadcast %cst_23 : f32 to vector<8x1024xf32>
    %73 = arith.maximumf %71, %72 : vector<8x1024xf32>
    %74 = arith.truncf %73 : vector<8x1024xf32> to vector<8x1024xbf16>
    %c0_24 = arith.constant 0 : index
    %c0_25 = arith.constant 0 : index
    %75 = vector.load %arg11[%c0_24, %c0_25] : memref<1024x256xbf16, #tpu.memory_space<vmem>>, vector<1024x256xbf16>
    %cst_26 = arith.constant dense<0.000000e+00> : vector<8x256xf32>
    %76 = tpu.matmul %74, %75, %cst_26 {dimension_numbers = #tpu.dot_dimension_numbers<[1], [0], [0], [1], [0, 0, 1, 1], [], []>} : vector<8x1024xbf16>, vector<1024x256xbf16>, vector<8x256xf32> -> vector<8x256xf32>
    %77 = arith.truncf %76 : vector<8x256xf32> to vector<8x256xbf16>
    %c0_27 = arith.constant 0 : index
    %c0_28 = arith.constant 0 : index
    %78 = vector.load %arg6[%c0_27, %c0_28] : memref<32x8xbf16, #tpu.memory_space<vmem>>, vector<32x8xbf16>
    %cst_29 = arith.constant dense<0.000000e+00> : vector<32x256xf32>
    %79 = tpu.matmul %78, %77, %cst_29 {dimension_numbers = #tpu.dot_dimension_numbers<[1], [0], [0], [1], [0, 0, 1, 1], [], []>} : vector<32x8xbf16>, vector<8x256xbf16>, vector<32x256xf32> -> vector<32x256xf32>
    %c0_30 = arith.constant 0 : index
    %c0_31 = arith.constant 0 : index
    %80 = vector.load %arg7[%c0_30, %c0_31] : memref<32x1xf32, #tpu.memory_space<vmem>>, vector<32x1xf32>
    %81 = vector.broadcast %80 : vector<32x1xf32> to vector<32x256xf32>
    %82 = arith.addf %79, %81 : vector<32x256xf32>
    %c0_32 = arith.constant 0 : index
    %c0_33 = arith.constant 0 : index
    %83 = vector.load %arg10[%c0_32, %c0_33] : memref<16x256xbf16, #tpu.memory_space<vmem>>, vector<16x256xbf16>
    %c0_34 = arith.constant 0 : index
    %c0_35 = arith.constant 0 : index
    %84 = vector.load %arg8[%c0_34, %c0_35] : memref<32x16xbf16, #tpu.memory_space<vmem>>, vector<32x16xbf16>
    %cst_36 = arith.constant dense<0.000000e+00> : vector<32x256xf32>
    %85 = tpu.matmul %84, %83, %cst_36 {dimension_numbers = #tpu.dot_dimension_numbers<[1], [0], [0], [1], [0, 0, 1, 1], [], []>} : vector<32x16xbf16>, vector<16x256xbf16>, vector<32x256xf32> -> vector<32x256xf32>
    %86 = arith.addf %82, %85 : vector<32x256xf32>
    %c0_37 = arith.constant 0 : index
    %c0_38 = arith.constant 0 : index
    %87 = vector.load %arg9[%c0_37, %c0_38] : memref<32x1xf32, #tpu.memory_space<vmem>>, vector<32x1xf32>
    %88 = vector.broadcast %87 : vector<32x1xf32> to vector<32x256xf32>
    %89 = arith.addf %86, %88 : vector<32x256xf32>
    %cst_39 = arith.constant 0.000000e+00 : f32
    %90 = vector.broadcast %cst_39 : f32 to vector<32x256xf32>
    %91 = arith.maximumf %89, %90 : vector<32x256xf32>
    %92 = arith.truncf %91 : vector<32x256xf32> to vector<32x256xbf16>
    %c0_40 = arith.constant 0 : index
    %c0_41 = arith.constant 0 : index
    %93 = vector.load %arg12[%c0_40, %c0_41] : memref<32x256xbf16, #tpu.memory_space<vmem>>, vector<32x256xbf16>
    tpu.vector_store %arg12[%c0_40, %c0_41], %92 {strides = array<i32>} : memref<32x256xbf16, #tpu.memory_space<vmem>>, vector<32x256xbf16>,
    return
  }
  func.func @transform_0(%arg0: i32) -> (i32, i32) {
    %c0_i32 = arith.constant 0 : i32
    %c0_i32_0 = arith.constant 0 : i32
    return %c0_i32, %arg0 : i32, i32
  }
  func.func @transform_1(%arg0: i32) -> (i32, i32) {
    %c0_i32 = arith.constant 0 : i32
    %c0_i32_0 = arith.constant 0 : i32
    %c0_i32_1 = arith.constant 0 : i32
    return %c0_i32, %c0_i32_0 : i32, i32
  }
  func.func @transform_2(%arg0: i32) -> (i32, i32) {
    %c0_i32 = arith.constant 0 : i32
    %c0_i32_0 = arith.constant 0 : i32
    %c0_i32_1 = arith.constant 0 : i32
    return %c0_i32, %c0_i32_0 : i32, i32
  }
  func.func @transform_3(%arg0: i32) -> (i32, i32) {
    %c0_i32 = arith.constant 0 : i32
    %c0_i32_0 = arith.constant 0 : i32
    %c0_i32_1 = arith.constant 0 : i32
    return %c0_i32, %c0_i32_0 : i32, i32
  }
  func.func @transform_4(%arg0: i32) -> (i32, i32) {
    %c0_i32 = arith.constant 0 : i32
    %c0_i32_0 = arith.constant 0 : i32
    %c0_i32_1 = arith.constant 0 : i32
    return %c0_i32, %c0_i32_0 : i32, i32
  }
  func.func @transform_5(%arg0: i32) -> (i32, i32) {
    %c0_i32 = arith.constant 0 : i32
    %c0_i32_0 = arith.constant 0 : i32
    %c0_i32_1 = arith.constant 0 : i32
    return %c0_i32, %c0_i32_0 : i32, i32
  }
  func.func @transform_6(%arg0: i32) -> (i32, i32) {
    %c0_i32 = arith.constant 0 : i32
    %c0_i32_0 = arith.constant 0 : i32
    %c0_i32_1 = arith.constant 0 : i32
    return %c0_i32, %c0_i32_0 : i32, i32
  }
  func.func @transform_7(%arg0: i32) -> (i32, i32) {
    %c0_i32 = arith.constant 0 : i32
    %c0_i32_0 = arith.constant 0 : i32
    %c0_i32_1 = arith.constant 0 : i32
    return %c0_i32, %c0_i32_0 : i32, i32
  }
  func.func @transform_8(%arg0: i32) -> (i32, i32) {
    %c0_i32 = arith.constant 0 : i32
    %c0_i32_0 = arith.constant 0 : i32
    %c0_i32_1 = arith.constant 0 : i32
    return %c0_i32, %c0_i32_0 : i32, i32
  }
  func.func @transform_9(%arg0: i32) -> (i32, i32) {
    %c0_i32 = arith.constant 0 : i32
    %c0_i32_0 = arith.constant 0 : i32
    return %c0_i32, %arg0 : i32, i32
  }
  func.func @transform_10(%arg0: i32) -> (i32, i32) {
    %c0_i32 = arith.constant 0 : i32
    %c0_i32_0 = arith.constant 0 : i32
    %c0_i32_1 = arith.constant 0 : i32
    return %c0_i32, %c0_i32_0 : i32, i32
  }
  func.func @transform_11(%arg0: i32) -> (i32, i32) {
    %c0_i32 = arith.constant 0 : i32
    %c0_i32_0 = arith.constant 0 : i32
    return %c0_i32, %arg0 : i32, i32
  }
}

</mosaic_0001>

<bundles_post_ra>
// kernel: tpu_custom_call.1
= control target key start
LH: loop header
LB: loop body
LE: loop exit
PB: predicated region body
PF: predicated region fallthrough
CT: control target
= control target key end

     0   :  { %s4788_s0 = inlined_call_operand.hbm [shape: bf16[16,2048], index: 0, kind: input, shape index: {}]   ;;  %s4789_s1 = inlined_call_operand.vmem [shape: bf16[8,16], index: 1, kind: input, shape index: {}]   ;;  %s4790_s2 = inlined_call_operand.vmem [shape: f32[8,1], index: 2, kind: input, shape index: {}]   ;;  %s4791_s3 = inlined_call_operand.vmem [shape: bf16[8,72], index: 3, kind: input, shape index: {}]   ;;  %s4792_s4 = inlined_call_operand.vmem [shape: f32[8,1], index: 4, kind: input, shape index: {}]   ;;  %s4793_s5 = inlined_call_operand.vmem [shape: bf16[32,8], index: 5, kind: input, shape index: {}]   ;;  %s4794_s6 = inlined_call_operand.vmem [shape: f32[32,1], index: 6, kind: input, shape index: {}]   ;;  %s4795_s7 = inlined_call_operand.vmem [shape: bf16[32,16], index: 7, kind: input, shape index: {}]   ;;  %s4796_s8 = inlined_call_operand.vmem [shape: f32[32,1], index: 8, kind: input, shape index: {}]   ;;  %s4797_s9 = inlined_call_operand.vmem [shape: bf16[16,512], index: 9, kind: input, shape index: {}]   ;;  %s4798_s10 = inlined_call_operand.hbm [shape: bf16[1024,256], index: 10, kind: input, shape index: {}]   ;;  %s4799_s11 = inlined_call_operand.hbm [shape: bf16[32,512], index: 11, kind: output, shape index: {}]  }
   0x1   :  { %4830 = sst [smem:[#allocation16_spill]] %s4788_s0 }
   0x2   :  { %4831 = sst [smem:[#allocation17_spill]] %s4798_s10 }
   0x3   :  { %16 = vsyncpa [#allocation3], 0 }
   0x4   :  { %18 = vsyncpa [#allocation3 + $0x1], 0 }
   0x5   :  { %19 = vsyncpa [#allocation7], 0 }
   0x6   :  { %20 = vsyncpa [#allocation4], 0 }
   0x7   :  { %22 = vsyncpa [#allocation4 + $0x1], 0  ;;  %s3657_s17 = smov 0   ;;  %s3659_s18 = smov 0  }
   0x8   :  { %s3661_s19 = smov 0   ;;  %s3663_s20 = smov 0  }
   0x9 LB: > { %4832 = sst [smem:[#allocation12_spill]] %s3562_s17  ;;  %s3678_s21 = sadd.s32 4294967295, %s3574_s20   ;;  %s3574_s20 = sphi %s3663_s20, %s4952_s20   ;;  %s3570_s19 = sphi %s3661_s19, %s4956_s19   ;;  %s3566_s18 = sphi %s3659_s18, %s4955_s18   ;;  %s3562_s17 = sphi %s3657_s17, %s4954_s17  }
   0xa   : > { %s2765_s22 = sadd.s32 4294967294, %s3574_s20   ;;  %s3682_s23 = sadd.s32 1, %s3574_s20  }
   0xb   : > { %4833 = sst [smem:[#allocation13_spill]] %s3682_s23  ;;  %s35_s24 = sadd.s32 1, %s3570_s19 }
   0xc   : > { %s32_s25 = ssub.s32 %s3574_s20, %s3682_s23  ;;  %p42_p0 = scmp.ne.s32.totalorder %s3570_s19, %s3566_s18 }
   0xd   : > { %p33_p1 = scmp.eq.s32.totalorder %s32_s25, 0  ;;  %p43_p2 = scmp.eq.s32.totalorder %s3574_s20, 0 }
   0xe   : > { %p48_p3 = scmp.ne.s32.totalorder %s3566_s18, %s3562_s17  ;;  %p4803_p4 = scmp.eq.s32.totalorder %s3678_s21, 0 }
   0xf   : > { %s3694_s26 = scalar_select %p33_p1, %s3570_s19, %s35_s24  }
  0x10   : > { %p3696_p5 = por %p43_p2, %p42_p0  ;;  %p3702_p6 = por %p4803_p4, %p48_p3 }
  0x11   : > { %4834 = sst [smem:[#allocation14_spill]] %s3694_s26  ;;  %p287_p7 = scmp.eq.s32.totalorder %s3678_s21, 1 }
  0x12   : > { %s4835_s27 = scalar_select %p3696_p5, 1, 0 }
  0x13   : > { %s4836_s28 = scalar_select %p3702_p6, 1, 0 }
  0x14   : > { %p293_p8 = scmp.eq.s32.totalorder %s2765_s22, 1  ;;  %p2766_p9 = scmp.ge.s32.totalorder %s3574_s20, 1 }
  0x15   : > { %p300_p10 = scmp.lt.s32.totalorder %s3574_s20, 3  ;;  %p3709_p11 = por %p287_p7, %p42_p0 }
  0x16   : > { %p3713_p12 = por %p293_p8, %p48_p3  ;;  %s3576_s13 = smov [#allocation6]  }
  0x17   : > { %s4837_s29 = scalar_select %p3709_p11, 1, 0 }
  0x18   : > { %s4838_s30 = scalar_select %p3713_p12, 1, 0 }
  0x19   : > { %p3717_p13 = pnand %p2766_p9, %p300_p10  ;;  %s336_s14 = sshll.u32 %s3576_s13, 4  ;;  %s337_s14 = int_to_ptr.vmem [resolvable:$true] %s336_s14 }
  0x1a   : > { %4839 = sst [smem:[#allocation15_spill]] %s4838_s30  ;;  %s4842_s10 = sld [smem:[#allocation17_spill]] }
  0x1b   : > { %s4840_s12 = scalar_select %p3717_p13, 1, 0 }
  0x1c   : > { %p3085_p1 = pneg %p3717_p13 }
  0x1e   : > { %p3725_p2 = pnand %p3085_p1, %p4803_p4 }
  0x20   : > { %s3448_s24 = scalar_lea.hbm %s4842_s10, 16384  ;;  %p3450_p3 = pneg %p3725_p2 }
  0x21   : > { %p3449_p0 = scmp.ne.s32.totalorder %s4842_s10, %s3448_s24  ;;  %p3455_p9 = scmp.lt.u32.totalorder %s3448_s24, %s4842_s10 }
  0x23   : > { %p3451_p7 = pnand %p3450_p3, %p3449_p0 }
  0x25   : > { %p3452_p8 = pneg %p3451_p7 }
  0x27   : > { %p3457_p10 = pnand %p3455_p9, %p3452_p8 }
  0x29   : > { %3460 = shalt.err (!%p3457_p10)
}
  0x2a   : > { %s3461_s30 = scalar_lea.vmem %s337_s14, 16384  ;;  %p3469_p11 = scmp.lt.s32.totalorder %s337_s14, %s337_s14 }
  0x2b   : > { %p3462_p1 = scmp.ne.s32.totalorder %s337_s14, %s3461_s30  ;;  %p3470_p6 = scmp.lt.s32.totalorder %s3461_s30, %s3461_s30 }
  0x2d   : > { %p3464_p4 = pnand %p3462_p1, %p3450_p3  ;;  %p3471_p13 = por %p3470_p6, %p3469_p11 }
  0x2f   : > { %p3465_p12 = pneg %p3464_p4 }
  0x31   : > { %p3472_p5 = pnand %p3471_p13, %p3465_p12 }
  0x33   : > { %3475 = shalt.err (!%p3472_p5)
}
  0x34   : > { %s3577_s26 = smov 128   ;;  %s3578_s16 = smov 8  }
  0x35   : > { %3088 = dma.hbm_to_vmem [thread:$0]  (!%p3725_p2), %s4842_s10, 16384, %s337_s14, [#allocation7], %s3577_s26, %s3577_s26, %s3578_s16  }
  0x36   : > { %p2768_p0 = scmp.ge.s32.totalorder %s3574_s20, 2 }
  0x37   : > { %s3749_s23 = sand.u32 (!%p2768_p0), 1, %s3570_s19   ;;  %s3044_s30 = sshll.u32 (!%p2768_p0), %s3574_s20, 9 }
  0x38   : > { %346 = sbr.rel (%p2768_p0) target bundleno = 92 (0x5c), region = 52  ;;  %s2769_s24 = sshll.u32 (!%p2768_p0), %s3749_s23, 6 }
  0x39   : > { %s4843_s0 = sld [smem:[#allocation16_spill]] (!%p2768_p0)  ;;  %s354_s14 = scalar_lea.vmem (!%p2768_p0), [#allocation2], %s2769_s24 }
  0x3a   : > { %s361_s26 = sshll.u32 (!%p2768_p0), %s354_s14, 4  ;;  %s351_s16 = scalar_lea.sflag (!%p2768_p0), [#allocation3], %s3749_s23  ;;  %s3758_s26 = int_to_ptr.vmem [resolvable:$true] %s361_s26 }
  0x3b   : > { %p4844_p5 = scmp.ne.s32.totalorder (!%p2768_p0), %s4835_s27, 0 }
  0x3f   : > { %s3756_s17 = scalar_lea.hbm %s4843_s0, %s3044_s30  ;;  %s3480_s13 = scalar_lea.hbm %s4843_s0, 2048 }
  0x40   : > { %s3476_s22 = scalar_lea.hbm %s3756_s17, 1024  ;;  %p3481_p12 = scmp.lt.u32.totalorder %s3756_s17, %s4843_s0 }
  0x41   : > { %p3477_p4 = scmp.ne.s32.totalorder %s3756_s17, %s3476_s22  ;;  %p3482_p13 = scmp.lt.u32.totalorder %s3480_s13, %s3476_s22 }
  0x42   : > { %p3484_p3 = scmp.lt.u32.totalorder %s3476_s22, %s3756_s17 }
  0x43   : > { %p3478_p6 = pnand %p3477_p4, %p4844_p5  ;;  %p3483_p2 = por %p3482_p13, %p3481_p12 }
  0x45   : > { %p3479_p11 = pneg %p3478_p6  ;;  %p3485_p7 = por %p3484_p3, %p3483_p2 }
  0x47   : > { %p3486_p8 = pnand %p3485_p7, %p3479_p11 }
  0x49   : > { %3489 = shalt.err (!%p3486_p8)
}
  0x4a   : > { %s3490_s24 = scalar_lea.vmem %s3758_s26, 1024  ;;  %s3579_s10 = smov [#allocation2]  }
  0x4b   : > { %p3491_p9 = scmp.ne.s32.totalorder %s3758_s26, %s3490_s24  ;;  %s3494_s14 = sshll.u32 %s3579_s10, 4  ;;  %s3495_s14 = int_to_ptr.vmem [resolvable:$false] %s3494_s14 }
  0x4c   : > { %s3496_s25 = scalar_lea.vmem %s3495_s14, 2048  ;;  %p3497_p4 = scmp.lt.s32.totalorder %s3758_s26, %s3495_s14 }
  0x4d   : > { %p3492_p10 = pnand %p3491_p9, %p4844_p5  ;;  %p3498_p6 = scmp.lt.s32.totalorder %s3496_s25, %s3490_s24 }
  0x4f   : > { %p3493_p1 = pneg %p3492_p10  ;;  %p3499_p12 = por %p3498_p6, %p3497_p4 }
  0x51   : > { %p3500_p13 = pnand %p3499_p12, %p3493_p1 }
  0x53   : > { %3503 = shalt.err (!%p3500_p13)
}
  0x54   : > { %s3580_s22 = smov 1024   ;;  %s3581_s13 = smov 512  }
  0x55   : > { %s3582_s30 = smov 32   ;;  %370 = sbr.rel (!%p4844_p5) target bundleno = 92 (0x5c), region = 60 }
  0x56   : > { %3079 = dma.hbm_to_vmem [thread:$0]  (%p4844_p5), %s3756_s17, 1024, %s3758_s26, %s351_s16, %s3580_s22, %s3581_s13, %s3582_s30  }
  0x57   : > { %s2772_s15 = sshll.u32 (%p4844_p5), %s3749_s23, 4  ;;  %s3045_s24 = sshll.u32 (%p4844_p5), %s3574_s20, 3 }
  0x58   : > { %s377_s25 = scalar_lea.vmem (%p4844_p5), %s4797_s9, %s3045_s24  ;;  %s374_s0 = scalar_lea.vmem (%p4844_p5), [#allocation5], %s2772_s15 }
  0x59   : > { %v407_v0 = vld [vmem:[%s377_s25] sm:$0xff] (%p4844_p5)  ;;  %v409_v1 = vld [vmem:[%s377_s25 + $0x10] sm:$0xff] (%p4844_p5) }
  0x5a   : > { %408 = vst [vmem:[%s374_s0] sm:$0xff] (%p4844_p5), %v407_v0  ;;  %410 = vst [vmem:[%s374_s0 + $0x8] sm:$0xff] (%p4844_p5), %v409_v1 }
  0x5c PF: > { %p4845_p11 = scmp.ne.s32.totalorder %s4840_s12, 0 }
  0x5d   : > { %s3794_s17 = sand.u32 (!%p4845_p11), 1, %s3566_s18   ;;  %p4846_p5 = scmp.ne.s32.totalorder (!%p4845_p11), %s4836_s28, 0 }
  0x5e   : > { %419 = sbr.rel (%p4845_p11) target bundleno = 1264 (0x4f0), region = 98  ;;  %s2776_s27 = sshll.u32 (!%p4845_p11), %s3794_s17, 6 }
  0x5f   : > { %s422_s23 = scalar_lea.sflag (!%p4845_p11), [#allocation3], %s3794_s17  ;;  %s425_s26 = scalar_lea.vmem (!%p4845_p11), [#allocation2], %s2776_s27 }
  0x65   : > { %3549 = dma.done.wait (%p4846_p5), %s422_s23, 1024  }
  0x66   : > { %3551 = vsyncadd (%p4846_p5), %s422_s23, 4294966272  ;;  %s2777_s0 = sshll.u32 %s3794_s17, 4  ;;  %p4847_p2 = scmp.eq.s32.totalorder %s3678_s21, 0 }
  0x67   : > { %s3803_s16 = scalar_lea.vmem [#allocation5], %s2777_s0 }
  0x68   : > { %3553 = dma.done.wait (%p4847_p2), [#allocation7], 16384   ;;  %p4848_p3 = pmov %p4847_p2 }
  0x69   : > { %v4816_v2 = vmov 0   ;;  %v483_v3 = vld [vmem:[%s425_s26] sm:$0xff]  ;;  %v484_v5 = vld [vmem:[%s425_s26 + $0x8] sm:$0xff]  ;;  %v485_v9 = vld [vmem:[%s425_s26 + $0x10] sm:$0xff]  ;;  %vm4809_vm0 = vcmask 130048   ;;  %s3584_s30 = smov 127   ;;  %v714_v0 = vlaneseq }
  0x6a   : > { %3555 = vsyncadd (%p4848_p3), [#allocation7], 4294950912  ;;  %574 = vmatprep.mubr.bf16.mxu0 %v4816_v2  ;;  %615 = vmatprep.mubr.bf16.mxu1 %v4816_v2  ;;  %v487_v4 = vld [vmem:[%s425_s26 + $0x20] sm:$0xff]  ;;  %v488_v7 = vld [vmem:[%s425_s26 + $0x28] sm:$0xff]  ;;  %s3585_s15 = smov 16   ;;  %s3586_s24 = smov 17  }
  0x6b   : > { %3147 = vset.pattern.permute.xlu0 %v4816_v2  ;;  %3248 = vset.pattern.permute.xlu1 %v4816_v2  ;;  %v2781_v6 = vcombine.high %v483_v3, %v487_v4  ;;  %v2780_v8 = vcombine.low %v483_v3, %v487_v4  ;;  %v2783_v10 = vcombine.high %v484_v5, %v488_v7  ;;  %v491_v12 = vld [vmem:[%s4789_s1] sm:$0xf]  ;;  %v489_v13 = vld [vmem:[%s425_s26 + $0x30] sm:$0xff]  ;;  %v486_v14 = vld [vmem:[%s425_s26 + $0x18] sm:$0xff]  ;;  %s3587_s10 = smov 15   ;;  %s3588_s14 = smov 1  }
  0x6c   : > { %v2782_v11 = vcombine.low %v484_v5, %v488_v7  ;;  %v490_v15 = vld [vmem:[%s425_s26 + $0x38] sm:$0xff]  ;;  %v2785_v16 = vcombine.high %v485_v9, %v489_v13  ;;  %v492_v18 = vld [vmem:[%s4790_s2] sm:$0xff]  ;;  %v2784_v19 = vcombine.low %v485_v9, %v489_v13  ;;  %s3589_s25 = smov 112   ;;  %s3590_s27 = smov 113   ;;  %v2391_v61 = vld [vmem:[%s4794_s6 + $0x10] sm:$0xff]  ;;  %v3941_v4 = vand.u32 127, %v714_v0 }
  0x6d   : > { %542 = vmatprep.subr.bf16.mxu0 %v2781_v6  ;;  %v2787_v17 = vcombine.high %v486_v14, %v490_v15  ;;  %583 = vmatprep.subr.bf16.mxu1 %v2783_v10  ;;  %v2786_v20 = vcombine.low %v486_v14, %v490_v15  ;;  %s3591_s23 = smov 111   ;;  %v2389_v60 = vld [vmem:[%s4794_s6] sm:$0xff]  ;;  %v2584_v63 = vld [vmem:[%s4796_s8 + $0x10] sm:$0xff]  ;;  %v2390_v3 = vld [vmem:[%s4794_s6 + $0x8] sm:$0xff]  ;;  %vm3592_vm4 = vmmov 1   ;;  %s3050_s28 = sshll.u32 %s3678_s21, 7 }
  0x6e   : > { %543 = vmatpush1.bf16.msra.mxu0 %v2780_v8  ;;  %584 = vmatpush1.bf16.msra.mxu1 %v2782_v11  ;;  %v2582_v62 = vld [vmem:[%s4796_s8] sm:$0xff]  ;;  %v2392_v5 = vld [vmem:[%s4794_s6 + $0x18] sm:$0xff]  ;;  %v3947_v6 = vadd.s32 128, %v3941_v4  ;;  %v2583_v7 = vld [vmem:[%s4796_s8 + $0x8] sm:$0xff]  ;;  %vm4812_vm1 = vcmp.lt.s32.totalorder %v3941_v4, 16  ;;  %vm4810_vm2 = vcmp.lt.s32.totalorder %v3941_v4, 17  ;;  %s4744_s13 = scalar_lea.hbm %s4799_s11, %s3050_s28 }
  0x6f   : > { %624 = vmatprep.subr.bf16.mxu0 %v2785_v16  ;;  %665 = vmatprep.subr.bf16.mxu1 %v2787_v17  ;;  %v1236_v1 = vld [vmem:[%s4792_s4] sm:$0xff]  ;;  %v2585_v9 = vld [vmem:[%s4796_s8 + $0x18] sm:$0xff]  ;;  %vm893_vm8 = vcmp.lt.s32.totalorder %v3941_v4, 15  ;;  %vm950_vm9 = vcmp.lt.s32.totalorder %v3941_v4, 1  ;;  %vm999_vm14 = vcmp.lt.s32.totalorder %v3941_v4, 127  ;;  %v719_v0 = vadd.s32 512, %v3941_v4 }
  0x70   : > { %495 = vperm.xlu0 %3147, %v492_v18   ;;  %v724_v8 = vand.u32 255, %v3947_v6  ;;  %p4948_p8 = scmp.ne.s32.totalorder %s4837_s29, 0  ;;  %s3593_s21 = smov [#allocation8]  }
  0x71   : > { %2788 = vmatmul.mubr.msk.bf16.vlgmr.msra.gmra.mrb[0].mxu0 %vm4809_vm0, %v491_v12  ;;  %2789 = vmatmul.mubr.msk.bf16.vlgmr.msra.gmra.mrb[0].mxu1 %vm4809_vm0, %v491_v12 }
  0x72   : > { %625 = vmatpush1.bf16.msra.mxu0 %v2784_v19  ;;  %666 = vmatpush1.bf16.msra.mxu1 %v2786_v20  ;;  %v3958_v11 = vand.u32 15, %v724_v8 }
  0x73   : > { %656 = vmatprep.mubr.bf16.mxu0 %v4816_v2  ;;  %697 = vmatprep.mubr.bf16.mxu1 %v4816_v2 }
  0x74   : > { %vm756_vm3 = vcmp.ge.s32.totalorder %v3958_v11, 1  ;;  %vm764_vm11 = vcmp.lt.s32.totalorder %v3958_v11, 15 }
  0x75   : > { %vm2792_vm5 = vmpackc.low %vm3592_vm4, %vm756_vm3 }
  0x76   : > { %vm4052_vm15 = vmpackc.low %vm756_vm3, %vm764_vm11 }
  0x79   : > { %2790 = vmatmul.mubr.msk.bf16.vlgmr.msra.gmra.mrb[4].mxu0 %vm4809_vm0, %v491_v12  ;;  %2791 = vmatmul.mubr.msk.bf16.vlgmr.msra.gmra.mrb[4].mxu1 %vm4809_vm0, %v491_v12  ;;  %vm4065_vm0 = vcmp.lt.s32.totalorder %v724_v8, 240 }
  0x7a   : > { %1303 = vmatprep.mubr.bf16.mxu0 %v4816_v2  ;;  %1344 = vmatprep.mubr.bf16.mxu1 %v4816_v2 }
  0xef   : > { %v496_v21 = vpop.permute.xlu0 %495 }
 0x144   : > { %v576_v22 = vpop.f32.mrb[0].mxu0  ;;  %v617_v24 = vpop.f32.mrb[0].mxu1 }
 0x145   : > { %v577_v23 = vadd.f32 %v576_v22, %v496_v21  ;;  %v578_v25 = vpop.f32.mrb[1].mxu0  ;;  %v619_v27 = vpop.f32.mrb[1].mxu1  ;;  %v618_v34 = vadd.f32 %v617_v24, %v496_v21 }
 0x146   : > { %v579_v26 = vadd.f32 %v578_v25, %v496_v21  ;;  %v580_v28 = vpop.f32.mrb[2].mxu0  ;;  %v621_v31 = vpop.f32.mrb[2].mxu1  ;;  %v620_v52 = vadd.f32 %v619_v27, %v496_v21 }
 0x147   : > { %v3827_v29 = vmax.f32 %v577_v23, 0.0  ;;  %v581_v30 = vpop.f32.mrb[3].mxu0  ;;  %v622_v33 = vpop.f32.mrb[3].mxu1  ;;  %v3837_v39 = vmax.f32 %v618_v34, 0.0 }
 0x148   : > { %v3829_v32 = vmax.f32 %v579_v26, 0.0  ;;  %v3865_v54 = vmax.f32 %v620_v52, 0.0 }
 0x149   : > { %983 = vrot.lane.b32.xlu0 %v3827_v29, %s3584_s30 }
 0x14a   : > { %v3153_v35 = vpack.i.bf16 %v3829_v32, %v3827_v29  ;;  %v3168_v47 = vpack.i.bf16 %v3837_v39, %v3829_v32 }
 0x14c   : > { %v658_v36 = vpop.f32.mrb[4].mxu0  ;;  %3154 = vrot.lane.b32.xlu1 %v3153_v35, %s3585_s15  ;;  %v699_v37 = vpop.f32.mrb[4].mxu1 }
 0x14d   : > { %v660_v38 = vpop.f32.mrb[5].mxu0  ;;  %3149 = vrot.lane.b32.xlu0 %v3153_v35, %s3586_s24  ;;  %v701_v40 = vpop.f32.mrb[5].mxu1  ;;  %v659_v42 = vadd.f32 %v658_v36, %v496_v21  ;;  %v700_v56 = vadd.f32 %v699_v37, %v496_v21 }
 0x14e   : > { %v662_v41 = vpop.f32.mrb[6].mxu0  ;;  %v702_v43 = vadd.f32 %v701_v40, %v496_v21  ;;  %v703_v44 = vpop.f32.mrb[6].mxu1  ;;  %v661_v51 = vadd.f32 %v660_v38, %v496_v21  ;;  %v723_v21 = vand.u32 255, %v3941_v4 }
 0x14f   : > { %v663_v45 = vpop.f32.mrb[7].mxu0  ;;  %v704_v46 = vpop.f32.mrb[7].mxu1  ;;  %v3843_v48 = vmax.f32 %v659_v42, 0.0  ;;  %v3876_v57 = vmax.f32 %v700_v56, 0.0 }
 0x150   : > { %3159 = vrot.lane.b32.xlu1 %v3153_v35, %s3587_s10  ;;  %v3845_v49 = vmax.f32 %v702_v43, 0.0  ;;  %v3862_v53 = vmax.f32 %v661_v51, 0.0  ;;  %v3989_v25 = vand.u32 15, %v723_v21  ;;  %vm3995_vm6 = vcmp.ge.s32.totalorder %v723_v21, 16 }
 0x151   : > { %3164 = vrot.lane.b32.xlu0 %v3153_v35, %s3588_s14 }
 0x152   : > { %v3188_v50 = vpack.i.bf16 %v3843_v48, %v3845_v49  ;;  %v3213_v55 = vpack.i.bf16 %v3865_v54, %v3862_v53  ;;  %v3228_v58 = vpack.i.bf16 %v3876_v57, %v3862_v53  ;;  %v3243_v59 = vpack.i.bf16 %v3862_v53, %v3843_v48 }
 0x153   : > { %vm755_vm7 = vcmp.ge.s32.totalorder %v3989_v25, 1  ;;  %vm763_vm12 = vcmp.lt.s32.totalorder %v3989_v25, 15 }
 0x154   : > { %3169 = vrot.lane.b32.xlu1 %v3168_v47, %s3584_s30  ;;  %vm4013_vm10 = vmand %vm3995_vm6, %vm755_vm7 }
 0x155   : > { %3179 = vrot.lane.b32.xlu0 %v3168_v47, %s3589_s25  ;;  %vm2795_vm13 = vmpackc.low %vm3995_vm6, %vm4013_vm10 }
 0x156   : > { %vm2804_vm10 = vmpackc.low %vm764_vm11, %vm3592_vm4 }
 0x158   : > { %3174 = vrot.lane.b32.xlu1 %v3168_v47, %s3590_s27 }
 0x159   : > { %3189 = vrot.lane.b32.xlu0 %v3188_v50, %s3585_s15 }
 0x15c   : > { %3184 = vrot.lane.b32.xlu1 %v3188_v50, %s3586_s24 }
 0x15d   : > { %3199 = vrot.lane.b32.xlu0 %v3188_v50, %s3588_s14 }
 0x160   : > { %3194 = vrot.lane.b32.xlu1 %v3188_v50, %s3587_s10 }
 0x161   : > { %1089 = vrot.lane.b32.xlu0 %v3827_v29, %s3589_s25 }
 0x164   : > { %1032 = vrot.lane.b32.xlu1 %v3827_v29, %s3590_s27 }
 0x165   : > { %1142 = vrot.lane.b32.xlu0 %v3837_v39, %s3591_s23 }
 0x168   : > { %3204 = vrot.lane.b32.xlu1 %v3153_v35, %s3591_s23 }
 0x169   : > { %991 = vrot.lane.b32.xlu0 %v3843_v48, %s3584_s30 }
 0x16c   : > { %1040 = vrot.lane.b32.xlu1 %v3843_v48, %s3590_s27 }
 0x16d   : > { %3214 = vrot.lane.b32.xlu0 %v3213_v55, %s3585_s15 }
 0x170   : > { %3209 = vrot.lane.b32.xlu1 %v3213_v55, %s3586_s24 }
 0x171   : > { %3224 = vrot.lane.b32.xlu0 %v3213_v55, %s3588_s14 }
 0x174   : > { %3219 = vrot.lane.b32.xlu1 %v3213_v55, %s3587_s10 }
 0x175   : > { %1097 = vrot.lane.b32.xlu0 %v3843_v48, %s3589_s25 }
 0x178   : > { %3229 = vrot.lane.b32.xlu1 %v3228_v58, %s3584_s30 }
 0x179   : > { %3239 = vrot.lane.b32.xlu0 %v3228_v58, %s3589_s25 }
 0x17c   : > { %3234 = vrot.lane.b32.xlu1 %v3228_v58, %s3590_s27 }
 0x17d   : > { %1150 = vrot.lane.b32.xlu0 %v3876_v57, %s3591_s23 }
 0x180   : > { %3244 = vrot.lane.b32.xlu1 %v3243_v59, %s3591_s23 }
 0x181   : > { %832 = vrot.lane.b32.xlu0 %v3837_v39, %s3585_s15 }
 0x184   : > { %775 = vrot.lane.b32.xlu1 %v3837_v39, %s3586_s24 }
 0x185   : > { %938 = vrot.lane.b32.xlu0 %v3837_v39, %s3588_s14 }
 0x188   : > { %881 = vrot.lane.b32.xlu1 %v3837_v39, %s3587_s10 }
 0x189   : > { %1038 = vrot.lane.b32.xlu0 %v3865_v54, %s3590_s27 }
 0x18c   : > { %989 = vrot.lane.b32.xlu1 %v3865_v54, %s3584_s30 }
 0x18d   : > { %1144 = vrot.lane.b32.xlu0 %v3865_v54, %s3591_s23 }
 0x190   : > { %1095 = vrot.lane.b32.xlu1 %v3865_v54, %s3589_s25 }
 0x191   : > { %840 = vrot.lane.b32.xlu0 %v3876_v57, %s3585_s15 }
 0x194   : > { %783 = vrot.lane.b32.xlu1 %v3876_v57, %s3586_s24  ;;  %s3508_s24 = sshll.u32 %s3593_s21, 4  ;;  %s3509_s24 = int_to_ptr.vmem [resolvable:$false] %s3508_s24 }
 0x195   : > { %946 = vrot.lane.b32.xlu0 %v3876_v57, %s3588_s14 }
 0x198   : > { %889 = vrot.lane.b32.xlu1 %v3876_v57, %s3587_s10  ;;  %s3510_s10 = scalar_lea.vmem %s3509_s24, 1024 }
 0x199   : > { %1046 = vrot.lane.b32.xlu0 %v3845_v49, %s3590_s27 }
 0x19c   : > { %997 = vrot.lane.b32.xlu1 %v3845_v49, %s3584_s30  ;;  %s2651_s30 = scalar_lea.sflag [#allocation4], %s3794_s17 }
 0x19d   : > { %1152 = vrot.lane.b32.xlu0 %v3845_v49, %s3591_s23  ;;  %s2779_s23 = sshll.u32 %s3794_s17, 5 }
 0x19e   : > { %s478_s26 = scalar_lea.vmem [#allocation8], %s2779_s23 }
 0x19f   : > { %s2664_s0 = sshll.u32 %s478_s26, 4  ;;  %s4739_s0 = int_to_ptr.vmem [resolvable:$true] %s2664_s0 }
 0x1a0   : > { %1103 = vrot.lane.b32.xlu1 %v3845_v49, %s3589_s25  ;;  %s3504_s15 = scalar_lea.vmem %s4739_s0, 512  ;;  %p3511_p1 = scmp.lt.s32.totalorder %s4739_s0, %s3509_s24 }
 0x1a1   : > { %2395 = vperm.xlu0 %3147, %v2389_v60   ;;  %p3505_p7 = scmp.ne.s32.totalorder %s4739_s0, %s3504_s15  ;;  %p3512_p4 = scmp.lt.s32.totalorder %s3510_s10, %s3504_s15 }
 0x1a3   : > { %p3506_p9 = pnand %p3505_p7, %p4948_p8  ;;  %p3513_p6 = por %p3512_p4, %p3511_p1 }
 0x1a4   : > { %1239 = vperm.xlu1 %3248, %v1236_v1  }
 0x1a5   : > { %2405 = vperm.xlu0 %3147, %v2391_v61   ;;  %p3507_p10 = pneg %p3506_p9 }
 0x1a7   : > { %p3514_p12 = pnand %p3513_p6, %p3507_p10 }
 0x1a8   : > { %2400 = vperm.xlu1 %3248, %v2390_v3  }
 0x1a9   : > { %2588 = vperm.xlu0 %3147, %v2582_v62  }
 0x1ac   : > { %2410 = vperm.xlu1 %3248, %v2392_v5  }
 0x1ad   : > { %2598 = vperm.xlu0 %3147, %v2584_v63  }
 0x1b0   : > { %2593 = vperm.xlu1 %3248, %v2583_v7  }
 0x1b4   : > { %2603 = vperm.xlu1 %3248, %v2585_v9   ;;  %v4102_v9 = vadd.s32 640, %v3941_v4 }
 0x1bb   : > { %v3956_v10 = vpop.permute.xlu0 %983 }
 0x1be   : > { %v3961_v12 = vpop.permute.xlu1 %3154 }
 0x1bf   : > { %v3157_v13 = vunpack.i.h.bf16 %v3961_v12  ;;  %v3156_v14 = vunpack.i.l.bf16 %v3961_v12  ;;  %v3966_v15 = vpop.permute.xlu0 %3149 }
 0x1c0   : > { %v3152_v16 = vunpack.i.h.bf16 %v3966_v15  ;;  %v3151_v17 = vunpack.i.l.bf16 %v3966_v15 }
 0x1c1   : > { %v851_v18 = vsel %vm4812_vm1, %v3156_v14, %v3157_v13 }
 0x1c2   : > { %v794_v19 = vsel %vm4810_vm2, %v3151_v17, %v3152_v16  ;;  %v3979_v20 = vpop.permute.xlu1 %3159 }
 0x1c3   : > { %v2793_v22 = vpack.c.bf16 %v851_v18, %v794_v19  ;;  %v3985_v23 = vpop.permute.xlu0 %3164  ;;  %v3162_v31 = vunpack.i.h.bf16 %v3979_v20  ;;  %v3161_v33 = vunpack.i.l.bf16 %v3979_v20 }
 0x1c4   : > { %v3167_v34 = vunpack.i.h.bf16 %v3985_v23  ;;  %v3166_v35 = vunpack.i.l.bf16 %v3985_v23  ;;  %v3275_v23 = vld [vmem:[#allocation6 + $0x214] ss:$8 sps:$4 sm:$0xff]  }
 0x1c5   : > { %2794 = vmatprep.subr.msk.bf16.mxu0 %vm2792_vm5, %v2793_v22  ;;  %v900_v42 = vsel %vm893_vm8, %v3161_v33, %v3162_v31  ;;  %vm902_vm5 = vmand %vm3995_vm6, %vm763_vm12  ;;  %v727_v22 = vand.u32 255, %v719_v0 }
 0x1c6   : > { %v3987_v24 = vpop.permute.xlu1 %3169  ;;  %v957_v43 = vsel %vm950_vm9, %v3166_v35, %v3167_v34  ;;  %vm2801_vm6 = vmpackc.low %vm755_vm7, %vm902_vm5 }
 0x1c7   : > { %v3991_v26 = vpop.permute.xlu0 %3179  ;;  %v3172_v44 = vunpack.i.h.bf16 %v3987_v24  ;;  %v3171_v45 = vunpack.i.l.bf16 %v3987_v24  ;;  %v2799_v56 = vpack.c.bf16 %v957_v43, %v900_v42  ;;  %vm2807_vm5 = vmpackc.low %vm763_vm12, %vm3592_vm4 }
 0x1c8   : > { %v3182_v5 = vunpack.i.h.bf16 %v3991_v26  ;;  %v3181_v6 = vunpack.i.l.bf16 %v3991_v26 }
 0x1c9   : > { %v1005_v61 = vsel %vm999_vm14, %v3171_v45, %v3172_v44 }
 0x1ca   : > { %v3993_v27 = vpop.permute.xlu1 %3174 }
 0x1cb   : > { %v4000_v30 = vpop.permute.xlu0 %3189  ;;  %v3177_v62 = vunpack.i.h.bf16 %v3993_v27  ;;  %v3176_v63 = vunpack.i.l.bf16 %v3993_v27 }
 0x1cc   : > { %v4825_v36 = vunpack.i.l.bf16 %v4000_v30  ;;  %v3192_v25 = vunpack.i.h.bf16 %v4000_v30 }
 0x1ce   : > { %v4017_v38 = vpop.permute.xlu1 %3184  ;;  %v852_v46 = vsel %vm4812_vm1, %v4825_v36, %v3156_v14  ;;  %v1006_v14 = vsel %vm999_vm14, %v3956_v10, %v3171_v45 }
 0x1cf   : > { %v4827_v40 = vunpack.i.l.bf16 %v4017_v38  ;;  %v4021_v41 = vpop.permute.xlu0 %3199  ;;  %v3187_v19 = vunpack.i.h.bf16 %v4017_v38 }
 0x1d0   : > { %v4815_v50 = vunpack.i.l.bf16 %v4021_v41 }
 0x1d1   : > { %v795_v47 = vsel %vm4810_vm2, %v4827_v40, %v3151_v17  ;;  %vm4829_vm2 = vcmp.lt.s32.totalorder %v3941_v4, 113  ;;  %v2805_v17 = vpack.c.bf16 %v1005_v61, %v3829_v32  ;;  %v2808_v32 = vpack.c.bf16 %v1006_v14, %v3827_v29 }
 0x1d2   : > { %v2796_v52 = vpack.c.bf16 %v852_v46, %v795_v47  ;;  %v4056_v55 = vpop.permute.xlu1 %3194  ;;  %v958_v1 = vsel %vm950_vm9, %v4815_v50, %v3166_v35  ;;  %v1054_v21 = vsel %vm4829_vm2, %v3176_v63, %v3177_v62  ;;  %v728_v35 = vand.u32 255, %v4102_v9 }
 0x1d3   : > { %v4822_v58 = vunpack.i.l.bf16 %v4056_v55  ;;  %v4063_v59 = vpop.permute.xlu0 %1089  ;;  %v4150_v46 = vand.u32 15, %v727_v22 }
 0x1d4   : > { %2797 = vmatpush1.bf16.msk.msra.mxu0 %vm2795_vm13, %v2796_v52  ;;  %vm4828_vm13 = vcmp.lt.s32.totalorder %v3941_v4, 112 }
 0x1d5   : > { %v901_v3 = vsel %vm893_vm8, %v4822_v58, %v3161_v33  ;;  %2800 = vmatprep.subr.msk.bf16.mxu0 %vm4052_vm15, %v2799_v56  ;;  %vm4115_vm15 = vmand %vm4065_vm0, %vm756_vm3  ;;  %v1111_v28 = vsel %vm4828_vm13, %v3181_v6, %v3182_v5  ;;  %vm4813_vm3 = vcmp.lt.s32.totalorder %v3941_v4, 111  ;;  %v1112_v47 = vsel %vm4828_vm13, %v4063_v59, %v3181_v6 }
 0x1d6   : > { %v2802_v7 = vpack.c.bf16 %v958_v1, %v901_v3  ;;  %v4096_v8 = vpop.permute.xlu1 %1032  ;;  %v2811_v37 = vpack.c.bf16 %v1111_v28, %v1054_v21 }
 0x1d7   : > { %v4109_v18 = vpop.permute.xlu0 %1142  ;;  %v1055_v29 = vsel %vm4829_vm2, %v4096_v8, %v3176_v63  ;;  %v4171_v63 = vand.u32 15, %v728_v35 }
 0x1d8   : > { %2803 = vmatpush1.bf16.msk.msra.mxu0 %vm2801_vm6, %v2802_v7  ;;  %vm2810_vm6 = vmpackc.low %vm4065_vm0, %vm4115_vm15  ;;  %v2814_v11 = vpack.c.bf16 %v1112_v47, %v1055_v29  ;;  %vm759_vm15 = vcmp.ge.s32.totalorder %v4150_v46, 1  ;;  %v4212_v47 = vld [vmem:[%s4791_s3] sm:$0xf] }
 0x1d9   : > { %2806 = vmatprep.subr.msk.bf16.mxu0 %vm2804_vm10, %v2805_v17  ;;  %vm1164_vm10 = vmand %vm4065_vm0, %vm764_vm11  ;;  %vm4811_vm11 = vcmask 1043456  }
 0x1da   : > { %v4132_v33 = vpop.permute.xlu1 %3204  ;;  %vm2813_vm0 = vmpackc.low %vm3592_vm4, %vm755_vm7  ;;  %vm4177_vm7 = vcmp.ge.s32.totalorder %v727_v22, 16 }
 0x1db   : > { %v3207_v42 = vunpack.i.h.bf16 %v4132_v33  ;;  %v4814_v43 = vunpack.i.l.bf16 %v4132_v33  ;;  %v4144_v45 = vpop.permute.xlu0 %991  ;;  %v4935_v26 = vunpack.i.l.bf16 %v4132_v33 }
 0x1dc   : > { %2809 = vmatpush1.bf16.msk.msra.mxu0 %vm2807_vm5, %v2808_v32  ;;  %vm4197_vm5 = vmand %vm4177_vm7, %vm759_vm15 }
 0x1dd   : > { %v1160_v51 = vsel %vm4813_vm3, %v3207_v42, %v4109_v18  ;;  %v1161_v52 = vsel %vm4813_vm3, %v4814_v43, %v3207_v42  ;;  %2812 = vmatprep.subr.msk.bf16.mxu0 %vm2810_vm6, %v2811_v37  ;;  %vm4820_vm6 = vcmask 588800   ;;  %vm768_vm3 = vcmp.lt.s32.totalorder %v4171_v63, 15 }
 0x1de   : > { %v4165_v56 = vpop.permute.xlu1 %1040  ;;  %v1188_v60 = vsel %vm1164_vm10, %v1160_v51, 0.0  ;;  %v1187_v61 = vsel %vm763_vm12, %v1161_v52, 0.0  ;;  %vm760_vm12 = vcmp.ge.s32.totalorder %v4171_v63, 1  ;;  %vm767_vm10 = vcmp.lt.s32.totalorder %v4150_v46, 15 }
 0x1df   : > { %v4173_v0 = vpop.permute.xlu0 %3214  ;;  %v1228_v1 = vpack.c.bf16 %v1188_v60, %v1188_v60  ;;  %v1227_v3 = vpack.c.bf16 %v1187_v61, %v1187_v61 }
 0x1e0   : > { %v3217_v6 = vunpack.i.h.bf16 %v4173_v0  ;;  %v4819_v7 = vunpack.i.l.bf16 %v4173_v0  ;;  %2815 = vmatpush1.bf16.msk.msra.mxu0 %vm2813_vm0, %v2814_v11  ;;  %vm4863_vm0 = vcmp.lt.s32.totalorder %v3941_v4, 17 }
 0x1e1   : > { %2816 = vmatprep.subr.msk.bf16.mxu0 %vm4811_vm11, %v1228_v1  ;;  %v1248_v28 = vsel %vm4811_vm11, %v1227_v3, 0  ;;  %vm4864_vm11 = vmmov %vm4863_vm0 }
 0x1e2   : > { %v4184_v17 = vpop.permute.xlu1 %3209  ;;  %v847_v29 = vsel %vm4812_vm1, %v3192_v25, %v4819_v7  ;;  %v848_v42 = vsel %vm4812_vm1, %v3217_v6, %v3192_v25  ;;  %vm2844_vm1 = vmpackc.low %vm3592_vm4, %vm760_vm12  ;;  %v717_v25 = vadd.s32 256, %v3941_v4 }
 0x1e3   : > { %v3212_v21 = vunpack.i.h.bf16 %v4184_v17  ;;  %v4824_v32 = vunpack.i.l.bf16 %v4184_v17  ;;  %v4190_v22 = vpop.permute.xlu0 %3224 }
 0x1e4   : > { %1280 = vmatpush1.bf16.msra.mxu0 %v1248_v28  ;;  %v3227_v11 = vunpack.i.h.bf16 %v4190_v22  ;;  %v4818_v60 = vunpack.i.l.bf16 %v4190_v22  ;;  %v3197_v28 = vunpack.i.h.bf16 %v4056_v55 }
 0x1e5   : > { %v790_v51 = vsel %vm4863_vm0, %v3187_v19, %v4824_v32  ;;  %v791_v52 = vsel %vm4864_vm11, %v3212_v21, %v3187_v19  ;;  %vm2847_vm0 = vmpackc.low %vm4177_vm7, %vm4197_vm5  ;;  %v3202_v19 = vunpack.i.h.bf16 %v4021_v41 }
 0x1e6   : > { %v2845_v61 = vpack.c.bf16 %v847_v29, %v790_v51  ;;  %v2848_v1 = vpack.c.bf16 %v848_v42, %v791_v52  ;;  %v4228_v3 = vpop.permute.xlu1 %3219  ;;  %vm906_vm11 = vmand %vm4177_vm7, %vm767_vm10  ;;  %v4249_v51 = vadd.s32 384, %v3941_v4  ;;  %vm4287_vm7 = vcmp.lt.s32.totalorder %v728_v35, 240 }
 0x1e7   : > { %v3222_v43 = vunpack.i.h.bf16 %v4228_v3  ;;  %v4821_v29 = vunpack.i.l.bf16 %v4228_v3  ;;  %v4240_v42 = vpop.permute.xlu0 %1097  ;;  %2817 = vmatmul.mubr.msk.bf16.vlgmr.msra.gmra.mrb[8].mxu0 %vm4820_vm6, %v4212_v47  ;;  %v953_v52 = vsel %vm950_vm9, %v3202_v19, %v4818_v60  ;;  %v954_v50 = vsel %vm950_vm9, %v3227_v11, %v3202_v19  ;;  %vm2853_vm6 = vmpackc.low %vm759_vm15, %vm906_vm11 }
 0x1e8   : > { %2846 = vmatprep.subr.msk.bf16.mxu0 %vm2844_vm1, %v2845_v61  ;;  %1385 = vmatprep.mubr.bf16.mxu0 %v4816_v2  ;;  %vm2850_vm1 = vmpackc.low %vm760_vm12, %vm768_vm3 }
 0x1e9   : > { %v896_v61 = vsel %vm893_vm8, %v3197_v28, %v4821_v29  ;;  %v897_v2 = vsel %vm893_vm8, %v3222_v43, %v3197_v28  ;;  %2849 = vmatpush1.bf16.msk.msra.mxu0 %vm2847_vm0, %v2848_v1  ;;  %v725_v29 = vand.u32 255, %v717_v25  ;;  %vm4294_vm5 = vmpackc.low %vm768_vm3, %vm3592_vm4 }
 0x1ea   : > { %v2851_v19 = vpack.c.bf16 %v953_v52, %v896_v61  ;;  %v2854_v60 = vpack.c.bf16 %v954_v50, %v897_v2  ;;  %v4277_v7 = vpop.permute.xlu1 %3229  ;;  %v726_v50 = vand.u32 255, %v4249_v51  ;;  %vm2859_vm0 = vmpackc.low %vm767_vm10, %vm3592_vm4 }
 0x1eb   : > { %v4823_v28 = vunpack.i.h.bf16 %v4277_v7  ;;  %v3231_v14 = vunpack.i.l.bf16 %v4277_v7  ;;  %v4283_v37 = vpop.permute.xlu0 %3239  ;;  %vm4319_vm11 = vmand %vm4287_vm7, %vm760_vm12 }
 0x1ec   : > { %2852 = vmatprep.subr.msk.bf16.mxu0 %vm2850_vm1, %v2851_v19  ;;  %v4826_v35 = vunpack.i.h.bf16 %v4283_v37  ;;  %v3241_v52 = vunpack.i.l.bf16 %v4283_v37  ;;  %vm2862_vm12 = vmpackc.low %vm4287_vm7, %vm4319_vm11  ;;  %vm4358_vm1 = vcmp.ge.s32.totalorder %v725_v29, 16 }
 0x1ed   : > { %v1001_v25 = vsel %vm999_vm14, %v3231_v14, %v4823_v28  ;;  %v1002_v9 = vsel %vm999_vm14, %v4144_v45, %v3231_v14  ;;  %2855 = vmatpush1.bf16.msk.msra.mxu0 %vm2853_vm6, %v2854_v60  ;;  %v4323_v28 = vand.u32 15, %v725_v29  ;;  %vm2865_vm6 = vmpackc.low %vm3592_vm4, %vm759_vm15  ;;  %vm4873_vm15 = vcmp.lt.s32.totalorder %v3941_v4, 111 }
 0x1ee   : > { %v2857_v61 = vpack.c.bf16 %v1001_v25, %v3862_v53  ;;  %v2860_v19 = vpack.c.bf16 %v1002_v9, %v3843_v48  ;;  %v4313_v58 = vpop.permute.xlu1 %3234  ;;  %v4333_v48 = vand.u32 15, %v726_v50  ;;  %v1107_v53 = vsel %vm4828_vm13, %v3241_v52, %v4826_v35 }
 0x1ef   : > { %v3237_v60 = vunpack.i.h.bf16 %v4313_v58  ;;  %v3236_v32 = vunpack.i.l.bf16 %v4313_v58  ;;  %v4327_v36 = vpop.permute.xlu0 %1150  ;;  %v1108_v25 = vsel %vm4828_vm13, %v4240_v42, %v3241_v52  ;;  %vm4874_vm13 = vmmov %vm4873_vm15 }
 0x1f0   : > { %2858 = vmatprep.subr.msk.bf16.mxu0 %vm4294_vm5, %v2857_v61  ;;  %vm757_vm5 = vcmp.ge.s32.totalorder %v4323_v28, 1  ;;  %vm758_vm11 = vcmp.ge.s32.totalorder %v4333_v48, 1 }
 0x1f1   : > { %v1050_v9 = vsel %vm4829_vm2, %v3236_v32, %v3237_v60  ;;  %v1051_v2 = vsel %vm4829_vm2, %v4165_v56, %v3236_v32  ;;  %2861 = vmatpush1.bf16.msk.msra.mxu0 %vm2859_vm0, %v2860_v19  ;;  %vm1168_vm0 = vmand %vm4287_vm7, %vm768_vm3  ;;  %vm765_vm3 = vcmp.lt.s32.totalorder %v4323_v28, 15  ;;  %vm4877_vm7 = vcmp.lt.s32.totalorder %v3941_v4, 16 }
 0x1f2   : > { %v2863_v61 = vpack.c.bf16 %v1107_v53, %v1050_v9  ;;  %v2866_v35 = vpack.c.bf16 %v1108_v25, %v1051_v2  ;;  %v4353_v40 = vpop.permute.xlu1 %3244  ;;  %vm4381_vm2 = vmand %vm4358_vm1, %vm757_vm5 }
 0x1f3   : > { %v3247_v32 = vunpack.i.h.bf16 %v4353_v40  ;;  %v3246_v19 = vunpack.i.l.bf16 %v4353_v40  ;;  %v833_v14 = vpop.permute.xlu0 %832 }
 0x1f4   : > { %2864 = vmatprep.subr.msk.bf16.mxu0 %vm2862_vm12, %v2863_v61  ;;  %v849_v1 = vsel %vm4877_vm7, %v833_v14, %v3217_v6  ;;  %vm4879_vm12 = vcmp.lt.s32.totalorder %v3941_v4, 17 }
 0x1f5   : > { %v1156_v29 = vsel %vm4873_vm15, %v3247_v32, %v4327_v36  ;;  %v1157_v53 = vsel %vm4874_vm13, %v3246_v19, %v3247_v32  ;;  %2867 = vmatpush1.bf16.msk.msra.mxu0 %vm2865_vm6, %v2866_v35  ;;  %vm4878_vm13 = vmmov %vm4877_vm7  ;;  %vm4881_vm7 = vcmask 1043456  }
 0x1f6   : > { %v850_v35 = vsel %vm4878_vm13, %v3157_v13, %v833_v14  ;;  %v776_v25 = vpop.permute.xlu1 %775  ;;  %v1192_v9 = vsel %vm1168_vm0, %v1156_v29, 0.0  ;;  %v1191_v2 = vsel %vm767_vm10, %v1157_v53, 0.0  ;;  %vm4880_vm6 = vmmov %vm4879_vm12  ;;  %v3269_v14 = vld [vmem:[#allocation6 + $0x204] ss:$8 sps:$4 sm:$0xff]   ;;  %vm766_vm0 = vcmp.lt.s32.totalorder %v4333_v48, 15 }
 0x1f7   : > { %v792_v61 = vsel %vm4879_vm12, %v776_v25, %v3212_v21  ;;  %v793_v6 = vsel %vm4880_vm6, %v3152_v16, %v776_v25  ;;  %v939_v32 = vpop.permute.xlu0 %938  ;;  %v1232_v12 = vpack.c.bf16 %v1192_v9, %v1192_v9  ;;  %vm2818_vm15 = vmpackc.low %vm3592_vm4, %vm758_vm11  ;;  %v1231_v13 = vpack.c.bf16 %v1191_v2, %v1191_v2  ;;  %v3267_v9 = vld [vmem:[#allocation6 + $0x200] ss:$8 sps:$4 sm:$0xff]  }
 0x1f8   : > { %v2819_v46 = vpack.c.bf16 %v849_v1, %v792_v61  ;;  %v2822_v29 = vpack.c.bf16 %v850_v35, %v793_v6  ;;  %vm2821_vm10 = vmpackc.low %vm4358_vm1, %vm4381_vm2  ;;  %v721_v21 = vadd.s32 768, %v3941_v4  ;;  %v955_v53 = vsel %vm950_vm9, %v939_v32, %v3227_v11  ;;  %v3273_v6 = vld [vmem:[#allocation6 + $0x210] ss:$8 sps:$4 sm:$0xff]  }
 0x1f9   : > { %2868 = vmatprep.subr.msk.bf16.mxu0 %vm4881_vm7, %v1232_v12  ;;  %vm4882_vm13 = vmmov %vm4881_vm7  ;;  %vm4429_vm6 = vcmp.lt.s32.totalorder %v726_v50, 240  ;;  %v4434_v25 = vadd.s32 896, %v3941_v4  ;;  %v956_v2 = vsel %vm950_vm9, %v3167_v34, %v939_v32  ;;  %v3285_v35 = vld [vmem:[#allocation6 + $0x230] ss:$8 sps:$4 sm:$0xff]  }
 0x1fa   : > { %v1260_v15 = vsel %vm4882_vm13, %v1231_v13, 0  ;;  %vm4418_vm12 = vmand %vm4358_vm1, %vm765_vm3  ;;  %v882_v1 = vpop.permute.xlu1 %881  ;;  %2820 = vmatprep.subr.msk.bf16.mxu1 %vm2818_vm15, %v2819_v46  ;;  %vm4887_vm13 = vcmask 588800   ;;  %v3281_v46 = vld [vmem:[#allocation6 + $0x224] ss:$8 sps:$4 sm:$0xff]  }
 0x1fb   : > { %1362 = vmatpush1.bf16.msra.mxu0 %v1260_v15  ;;  %v898_v11 = vsel %vm893_vm8, %v882_v1, %v3222_v43  ;;  %v899_v51 = vsel %vm893_vm8, %v3162_v31, %v882_v1  ;;  %v1039_v50 = vpop.permute.xlu0 %1038  ;;  %2823 = vmatpush1.bf16.msk.msra.mxu1 %vm2821_vm10, %v2822_v29  ;;  %vm2824_vm15 = vmpackc.low %vm758_vm11, %vm766_vm0  ;;  %v729_v31 = vand.u32 255, %v721_v21  ;;  %v730_v61 = vand.u32 255, %v4434_v25 }
 0x1fc   : > { %2301 = vmatprep.subr.bf16.mxu0 %v3269_v14  ;;  %v2825_v34 = vpack.c.bf16 %v955_v53, %v898_v11  ;;  %v2828_v43 = vpack.c.bf16 %v956_v2, %v899_v51  ;;  %vm2827_vm7 = vmpackc.low %vm757_vm5, %vm4418_vm12  ;;  %v3287_v53 = vld [vmem:[#allocation6 + $0x234] ss:$8 sps:$4 sm:$0xff]   ;;  %v4904_v11 = vunpack.i.l.bf16 %v4017_v38 }
 0x1fd   : > { %vm4467_vm2 = vmand %vm4429_vm6, %vm766_vm0  ;;  %v4523_v48 = vand.u32 15, %v730_v61 }
 0x1fe   : > { %2869 = vmatmul.mubr.msk.bf16.vlgmr.msra.gmra.mrb[12].mxu0 %vm4887_vm13, %v4212_v47  ;;  %v990_v52 = vpop.permute.xlu1 %989  ;;  %2826 = vmatprep.subr.msk.bf16.mxu1 %vm2824_vm15, %v2825_v34  ;;  %vm4474_vm1 = vmpackc.low %vm766_vm0, %vm3592_vm4  ;;  %vm4894_vm0 = vcmp.lt.s32.totalorder %v3941_v4, 111  ;;  %v4909_v34 = vunpack.i.l.bf16 %v4000_v30  ;;  %v3291_v30 = vld [vmem:[#allocation6 + $0x240] ss:$8 sps:$4 sm:$0xff]  }
 0x1ff   : > { %2302 = vmatpush1.bf16.msra.mxu0 %v3267_v9  ;;  %v1003_v32 = vsel %vm999_vm14, %v990_v52, %v4144_v45  ;;  %v1004_v12 = vsel %vm999_vm14, %v3172_v44, %v990_v52  ;;  %v1145_v13 = vpop.permute.xlu0 %1144  ;;  %2829 = vmatpush1.bf16.msk.msra.mxu1 %vm2827_vm7, %v2828_v43  ;;  %vm4489_vm10 = vmpackc.low %vm765_vm3, %vm3592_vm4  ;;  %vm4898_vm7 = vcmp.lt.s32.totalorder %v3941_v4, 113  ;;  %v4911_v43 = vunpack.i.l.bf16 %v4184_v17 }
 0x200   : > { %2303 = vmatprep.subr.bf16.mxu0 %v3275_v23  ;;  %v2831_v29 = vpack.c.bf16 %v1003_v32, %v3865_v54  ;;  %v2834_v45 = vpack.c.bf16 %v1004_v12, %v3837_v39  ;;  %v1158_v24 = vsel %vm4894_vm0, %v1145_v13, %v3246_v19  ;;  %vm4895_vm12 = vmmov %vm4894_vm0  ;;  %v4510_v54 = vand.u32 15, %v729_v31  ;;  %v3279_v19 = vld [vmem:[#allocation6 + $0x220] ss:$8 sps:$4 sm:$0xff]   ;;  %v3251_v23 = vld [vmem:[#allocation6 + $0x4] ss:$8 sps:$4 sm:$0xff]  }
 0x201   : > { %v1159_v44 = vsel %vm4895_vm12, %v4109_v18, %v1145_v13  ;;  %vm4506_vm15 = vmand %vm4429_vm6, %vm758_vm11  ;;  %v1052_v39 = vsel %vm4898_vm7, %v1039_v50, %v4165_v56  ;;  %v1190_v56 = vsel %vm4467_vm2, %v1158_v24, 0.0  ;;  %vm4900_vm11 = vcmp.lt.s32.totalorder %v3941_v4, 112 }
 0x202   : > { %vm4899_vm13 = vmmov %vm4898_vm7  ;;  %v1096_v18 = vpop.permute.xlu1 %1095  ;;  %2832 = vmatprep.subr.msk.bf16.mxu1 %vm4474_vm1, %v2831_v29  ;;  %v1189_v16 = vsel %vm765_vm3, %v1159_v44, 0.0  ;;  %vm4545_vm0 = vcmp.ge.s32.totalorder %v729_v31, 16  ;;  %vm761_vm12 = vcmp.ge.s32.totalorder %v4510_v54, 1  ;;  %vm4910_vm7 = vcmp.lt.s32.totalorder %v3941_v4, 16 }
 0x203   : > { %v1053_v40 = vsel %vm4899_vm13, %v3177_v62, %v1039_v50  ;;  %2304 = vmatpush1.bf16.msra.mxu0 %v3273_v6  ;;  %v1109_v27 = vsel %vm4900_vm11, %v1096_v18, %v4240_v42  ;;  %vm4901_vm1 = vmmov %vm4900_vm11  ;;  %v841_v21 = vpop.permute.xlu0 %840  ;;  %2835 = vmatpush1.bf16.msk.msra.mxu1 %vm4489_vm10, %v2834_v45  ;;  %v1230_v42 = vpack.c.bf16 %v1190_v56, %v1190_v56  ;;  %vm4905_vm10 = vcmp.lt.s32.totalorder %v3941_v4, 17  ;;  %v3293_v50 = vld [vmem:[#allocation6 + $0x244] ss:$8 sps:$4 sm:$0xff]   ;;  %v3299_v45 = vld [vmem:[#allocation6 + $0x254] ss:$8 sps:$4 sm:$0xff]  }
 0x204   : > { %v1110_v62 = vsel %vm4901_vm1, %v3182_v5, %v1096_v18  ;;  %vm2836_vm3 = vmpackc.low %vm4429_vm6, %vm4506_vm15  ;;  %2305 = vmatprep.subr.bf16.mxu0 %v3281_v46  ;;  %v2837_v1 = vpack.c.bf16 %v1109_v27, %v1052_v39  ;;  %v1229_v5 = vpack.c.bf16 %v1189_v16, %v1189_v16  ;;  %vm762_vm6 = vcmp.ge.s32.totalorder %v4523_v48, 1  ;;  %v3305_v18 = vld [vmem:[#allocation6 + $0x264] ss:$8 sps:$4 sm:$0xff]   ;;  %v3345_v56 = vld [vmem:[#allocation6 + $0x2d0] ss:$8 sps:$4 sm:$0xff]  }
 0x205   : > { %v2840_v9 = vpack.c.bf16 %v1110_v62, %v1053_v40  ;;  %vm2839_vm2 = vmpackc.low %vm3592_vm4, %vm757_vm5  ;;  %vm4906_vm5 = vcmask 1043456   ;;  %v845_v38 = vsel %vm4910_vm7, %v841_v21, %v4909_v34  ;;  %vm770_vm11 = vcmp.lt.s32.totalorder %v4523_v48, 15  ;;  %v3257_v34 = vld [vmem:[#allocation6 + $0x24] ss:$8 sps:$4 sm:$0xff]  }
 0x206   : > { %v784_v2 = vpop.permute.xlu1 %783  ;;  %2838 = vmatprep.subr.msk.bf16.mxu1 %vm2836_vm3, %v2837_v1  ;;  %vm4560_vm15 = vmand %vm4545_vm0, %vm761_vm12  ;;  %v4914_v6 = vunpack.i.l.bf16 %v4056_v55  ;;  %v4915_v17 = vunpack.i.l.bf16 %v4173_v0  ;;  %v4919_v46 = vunpack.i.l.bf16 %v4021_v41  ;;  %v4922_v24 = vunpack.i.l.bf16 %v4228_v3  ;;  %v3297_v41 = vld [vmem:[#allocation6 + $0x250] ss:$8 sps:$4 sm:$0xff]   ;;  %v3311_v1 = vld [vmem:[#allocation6 + $0x274] ss:$8 sps:$4 sm:$0xff]  }
 0x207   : > { %2306 = vmatpush1.bf16.msra.mxu0 %v3279_v19  ;;  %v788_v28 = vsel %vm4905_vm10, %v784_v2, %v4904_v11  ;;  %v947_v51 = vpop.permute.xlu0 %946  ;;  %2841 = vmatpush1.bf16.msk.msra.mxu1 %vm2839_vm2, %v2840_v9  ;;  %vm2870_vm13 = vmpackc.low %vm3592_vm4, %vm762_vm6  ;;  %vm769_vm2 = vcmp.lt.s32.totalorder %v4510_v54, 15  ;;  %v4924_v3 = vmov 0   ;;  %v4925_v19 = vunpack.i.l.bf16 %v4190_v22  ;;  %v3252_v54 = vld [vmem:[#allocation6 + $0x10] ss:$8 sps:$4 sm:$0xff]   ;;  %v3329_v0 = vld [vmem:[#allocation6 + $0x2a4] ss:$8 sps:$4 sm:$0xff]  }
 0x208   : > { %2307 = vmatprep.subr.bf16.mxu0 %v3287_v53  ;;  %2842 = vmatprep.subr.msk.bf16.mxu1 %vm4906_vm5, %v1230_v42  ;;  %vm4912_vm1 = vmmov %vm4905_vm10  ;;  %v2871_v31 = vpack.c.bf16 %v845_v38, %v788_v28  ;;  %v951_v29 = vsel %vm950_vm9, %v947_v51, %v4919_v46  ;;  %v4928_v22 = vunpack.i.h.bf16 %v4277_v7  ;;  %v3303_v53 = vld [vmem:[#allocation6 + $0x260] ss:$8 sps:$4 sm:$0xff]   ;;  %v3321_v55 = vld [vmem:[#allocation6 + $0x290] ss:$8 sps:$4 sm:$0xff]  }
 0x209   : > { %v789_v20 = vsel %vm4912_vm1, %v4911_v43, %v784_v2  ;;  %vm4913_vm3 = vmmov %vm4906_vm5  ;;  %v952_v16 = vsel %vm950_vm9, %v4925_v19, %v947_v51  ;;  %v3309_v2 = vld [vmem:[#allocation6 + $0x270] ss:$8 sps:$4 sm:$0xff]   ;;  %v3255_v38 = vld [vmem:[#allocation6 + $0x20] ss:$8 sps:$4 sm:$0xff]  }
 0x20a   : > { %v890_v52 = vpop.permute.xlu1 %889  ;;  %v1254_v63 = vsel %vm4913_vm3, %v1229_v5, 0  ;;  %vm2873_vm10 = vmpackc.low %vm4545_vm0, %vm4560_vm15  ;;  %v3260_v43 = vld [vmem:[#allocation6 + $0x34] ss:$8 sps:$4 sm:$0xff]   ;;  %v3300_v19 = vld [vmem:[#allocation6 + $0xb0] ss:$8 sps:$4 sm:$0xff]  }
 0x20b   : > { %2308 = vmatpush1.bf16.msra.mxu0 %v3285_v35  ;;  %v894_v32 = vsel %vm893_vm8, %v890_v52, %v4914_v6  ;;  %v1047_v12 = vpop.permute.xlu0 %1046  ;;  %1321 = vmatpush1.bf16.msra.mxu1 %v1254_v63  ;;  %vm4916_vm5 = vmmov %vm4910_vm7  ;;  %v895_v44 = vsel %vm893_vm8, %v4922_v24, %v890_v52  ;;  %vm4631_vm8 = vcmp.lt.s32.totalorder %v730_v61, 240  ;;  %v3261_v52 = vld [vmem:[#allocation6 + $0x40] ss:$8 sps:$4 sm:$0xff]   ;;  %v3266_v63 = vld [vmem:[#allocation6 + $0x54] ss:$8 sps:$4 sm:$0xff]  }
 0x20c   : > { %2309 = vmatprep.subr.bf16.mxu0 %v3293_v50  ;;  %v846_v13 = vsel %vm4916_vm5, %v4915_v17, %v841_v21  ;;  %2872 = vmatprep.subr.msk.bf16.mxu1 %vm2870_vm13, %v2871_v31  ;;  %vm4594_vm7 = vmpackc.low %vm762_vm6, %vm770_vm11  ;;  %v2877_v15 = vpack.c.bf16 %v951_v29, %v894_v32  ;;  %vm4923_vm13 = vcmask 588800   ;;  %vm4937_vm5 = vcmp.lt.s32.totalorder %v3941_v4, 113  ;;  %v3315_v50 = vld [vmem:[#allocation6 + $0x280] ss:$8 sps:$4 sm:$0xff]   ;;  %v3263_v31 = vld [vmem:[#allocation6 + $0x44] ss:$8 sps:$4 sm:$0xff]  }
 0x20d   : > { %v2874_v14 = vpack.c.bf16 %v846_v13, %v789_v20  ;;  %vm4606_vm1 = vmand %vm4545_vm0, %vm769_vm2  ;;  %v3258_v20 = vld [vmem:[#allocation6 + $0x30] ss:$8 sps:$4 sm:$0xff]   ;;  %v3270_v6 = vld [vmem:[#allocation6 + $0x60] ss:$8 sps:$4 sm:$0xff]  }
 0x20e   : > { %v998_v39 = vpop.permute.xlu1 %997  ;;  %2843 = vmatmul.mubr.msk.bf16.vlgmr.msra.gmra.mrb[8].mxu1 %vm4923_vm13, %v4212_v47  ;;  %vm2879_vm0 = vmpackc.low %vm761_vm12, %vm4606_vm1  ;;  %v3278_v32 = vld [vmem:[#allocation6 + $0x74] ss:$8 sps:$4 sm:$0xff]   ;;  %v3284_v17 = vld [vmem:[#allocation6 + $0x84] ss:$8 sps:$4 sm:$0xff]  }
 0x20f   : > { %2310 = vmatpush1.bf16.msra.mxu0 %v3291_v30  ;;  %v1007_v40 = vsel %vm999_vm14, %v998_v39, %v3956_v10  ;;  %2875 = vmatpush1.bf16.msk.msra.mxu1 %vm2873_vm10, %v2874_v14  ;;  %v2880_v10 = vpack.c.bf16 %v952_v16, %v895_v44  ;;  %v1153_v27 = vpop.permute.xlu0 %1152  ;;  %vm2882_vm9 = vmpackc.low %vm770_vm11, %vm3592_vm4  ;;  %v1000_v25 = vsel %vm999_vm14, %v4928_v22, %v998_v39  ;;  %vm4933_vm14 = vcmp.lt.s32.totalorder %v3941_v4, 112  ;;  %v3264_v30 = vld [vmem:[#allocation6 + $0x50] ss:$8 sps:$4 sm:$0xff]   ;;  %v3323_v13 = vld [vmem:[#allocation6 + $0x294] ss:$8 sps:$4 sm:$0xff]  }
 0x210   : > { %1426 = vmatprep.mubr.bf16.mxu1 %v4924_v3  ;;  %2878 = vmatprep.subr.msk.bf16.mxu1 %vm4594_vm7, %v2877_v15  ;;  %v2883_v61 = vpack.c.bf16 %v1007_v40, %v3845_v49  ;;  %vm4653_vm15 = vmand %vm4631_vm8, %vm762_vm6  ;;  %vm4934_vm6 = vcmp.lt.s32.totalorder %v3941_v4, 111  ;;  %v2886_v5 = vpack.c.bf16 %v1000_v25, %v3876_v57  ;;  %v3317_v57 = vld [vmem:[#allocation6 + $0x284] ss:$8 sps:$4 sm:$0xff]   ;;  %v3249_v4 = vld [vmem:[#allocation6] ss:$8 sps:$4 sm:$0xff]  }
 0x211   : > { %2311 = vmatprep.subr.bf16.mxu0 %v3299_v45  ;;  %vm4661_vm3 = vmand %vm4631_vm8, %vm770_vm11  ;;  %v1155_v9 = vsel %vm4934_vm6, %v4327_v36, %v1153_v27  ;;  %v4938_v36 = vunpack.i.h.bf16 %v4283_v37  ;;  %v3282_v14 = vld [vmem:[#allocation6 + $0x80] ss:$8 sps:$4 sm:$0xff]   ;;  %v3290_v46 = vld [vmem:[#allocation6 + $0x94] ss:$8 sps:$4 sm:$0xff]  }
 0x212   : > { %v1104_v62 = vpop.permute.xlu1 %1103  ;;  %vm4936_vm10 = vmmov %vm4934_vm6  ;;  %v1193_v35 = vsel %vm769_vm2, %v1155_v9, 0.0  ;;  %v3327_v29 = vld [vmem:[#allocation6 + $0x2a0] ss:$8 sps:$4 sm:$0xff]   ;;  %v3288_v45 = vld [vmem:[#allocation6 + $0x90] ss:$8 sps:$4 sm:$0xff]  }
 0x213   : > { %2312 = vmatpush1.bf16.msra.mxu0 %v3297_v41  ;;  %v1113_v49 = vsel %vm4933_vm14, %v1104_v62, %v4063_v59  ;;  %2881 = vmatpush1.bf16.msk.msra.mxu1 %vm2879_vm0, %v2880_v10  ;;  %v1162_v48 = vsel %vm4936_vm10, %v1153_v27, %v4935_v26  ;;  %vm2885_vm11 = vmpackc.low %vm769_vm2, %vm3592_vm4  ;;  %v1056_v59 = vsel %vm4937_vm5, %v1047_v12, %v4096_v8  ;;  %vm4941_vm2 = vcmask 1043456   ;;  %v3296_v24 = vld [vmem:[#allocation6 + $0xa4] ss:$8 sps:$4 sm:$0xff]   ;;  %v3333_v44 = vld [vmem:[#allocation6 + $0x2b0] ss:$8 sps:$4 sm:$0xff]  }
 0x214   : > { %2313 = vmatprep.subr.bf16.mxu0 %v3305_v18  ;;  %2884 = vmatprep.subr.msk.bf16.mxu1 %vm2882_vm9, %v2883_v61  ;;  %vm2888_vm7 = vmpackc.low %vm4631_vm8, %vm4653_vm15  ;;  %v2889_v42 = vpack.c.bf16 %v1113_v49, %v1056_v59  ;;  %v1194_v8 = vsel %vm4661_vm3, %v1162_v48, 0.0  ;;  %v1233_v28 = vpack.c.bf16 %v1193_v35, %v1193_v35  ;;  %vm4943_vm9 = vcmask 588800   ;;  %v3335_v15 = vld [vmem:[#allocation6 + $0x2b4] ss:$8 sps:$4 sm:$0xff]   ;;  %v3294_v39 = vld [vmem:[#allocation6 + $0xa0] ss:$8 sps:$4 sm:$0xff]  }
 0x215   : > { %vm4939_vm1 = vmmov %vm4933_vm14  ;;  %v1234_v51 = vpack.c.bf16 %v1194_v8, %v1194_v8  ;;  %v3302_v41 = vld [vmem:[#allocation6 + $0xb4] ss:$8 sps:$4 sm:$0xff]   ;;  %v3339_v40 = vld [vmem:[#allocation6 + $0x2c0] ss:$8 sps:$4 sm:$0xff]   ;;  %vm2423_vm14 = vcmask 64512  }
 0x216   : > { %v1106_v33 = vsel %vm4939_vm1, %v4938_v36, %v1104_v62  ;;  %vm4940_vm13 = vmmov %vm4937_vm5  ;;  %v3341_v18 = vld [vmem:[#allocation6 + $0x2c4] ss:$8 sps:$4 sm:$0xff]   ;;  %v3347_v10 = vld [vmem:[#allocation6 + $0x2d4] ss:$8 sps:$4 sm:$0xff]  }
 0x217   : > { %2314 = vmatpush1.bf16.msra.mxu0 %v3303_v53  ;;  %2887 = vmatpush1.bf16.msk.msra.mxu1 %vm2885_vm11, %v2886_v5  ;;  %v1049_v37 = vsel %vm4940_vm13, %v3237_v60, %v1047_v12  ;;  %vm2891_vm8 = vmpackc.low %vm3592_vm4, %vm761_vm12  ;;  %v3254_v60 = vld [vmem:[#allocation6 + $0x14] ss:$8 sps:$4 sm:$0xff]   ;;  %v3276_v12 = vld [vmem:[#allocation6 + $0x70] ss:$8 sps:$4 sm:$0xff]   ;;  %vm4944_vm4 = vcmask 130048  }
 0x218   : > { %2315 = vmatprep.subr.bf16.mxu0 %v3311_v1  ;;  %2890 = vmatprep.subr.msk.bf16.mxu1 %vm2888_vm7, %v2889_v42  ;;  %v2892_v11 = vpack.c.bf16 %v1106_v33, %v1049_v37  ;;  %vm4942_vm0 = vmmov %vm4941_vm2  ;;  %v3308_v16 = vld [vmem:[#allocation6 + $0xc4] ss:$8 sps:$4 sm:$0xff]   ;;  %v3306_v27 = vld [vmem:[#allocation6 + $0xc0] ss:$8 sps:$4 sm:$0xff]  }
 0x219   : > { %v1266_v58 = vsel %vm4942_vm0, %v1233_v28, 0  ;;  %v3314_v22 = vld [vmem:[#allocation6 + $0xd4] ss:$8 sps:$4 sm:$0xff]   ;;  %v3353_v25 = vld [vmem:[#allocation6 + $0x2e4] ss:$8 sps:$4 sm:$0xff]   ;;  %vm4945_vm12 = vmmov %vm4944_vm4 }
 0x21a   : > { %v3351_v61 = vld [vmem:[#allocation6 + $0x2e0] ss:$8 sps:$4 sm:$0xff]   ;;  %v3312_v62 = vld [vmem:[#allocation6 + $0xd0] ss:$8 sps:$4 sm:$0xff]   ;;  %v3320_v21 = vld [vmem:[#allocation6 + $0xe4] ss:$8 sps:$4 sm:$0xff]  }
 0x21b   : > { %2316 = vmatpush1.bf16.msra.mxu0 %v3309_v2  ;;  %2893 = vmatpush1.bf16.msk.msra.mxu1 %vm2891_vm8, %v2892_v11  ;;  %v3359_v53 = vld [vmem:[#allocation6 + $0x2f4] ss:$8 sps:$4 sm:$0xff]   ;;  %v3357_v7 = vld [vmem:[#allocation6 + $0x2f0] ss:$8 sps:$4 sm:$0xff]   ;;  %v3318_v49 = vld [vmem:[#allocation6 + $0xe0] ss:$8 sps:$4 sm:$0xff]  }
 0x21c   : > { %2317 = vmatprep.subr.bf16.mxu0 %v3317_v57  ;;  %2894 = vmatprep.subr.msk.bf16.mxu1 %vm4941_vm2, %v1234_v51  ;;  %v3326_v1 = vld [vmem:[#allocation6 + $0xf4] ss:$8 sps:$4 sm:$0xff]   ;;  %v3365_v9 = vld [vmem:[#allocation6 + $0x304] ss:$8 sps:$4 sm:$0xff]   ;;  %v3324_v26 = vld [vmem:[#allocation6 + $0xf0] ss:$8 sps:$4 sm:$0xff]  }
 0x21d   : > { %v3332_v48 = vld [vmem:[#allocation6 + $0x104] ss:$8 sps:$4 sm:$0xff]   ;;  %v3330_v28 = vld [vmem:[#allocation6 + $0x100] ss:$8 sps:$4 sm:$0xff]   ;;  %v3338_v51 = vld [vmem:[#allocation6 + $0x114] ss:$8 sps:$4 sm:$0xff]  }
 0x21e   : > { %vm4946_vm15 = vmmov %vm4942_vm0 }
 0x21f   : > { %2318 = vmatpush1.bf16.msra.mxu0 %v3315_v50  ;;  %1403 = vmatpush1.bf16.msra.mxu1 %v1266_v58  ;;  %v3336_v50 = vld [vmem:[#allocation6 + $0x110] ss:$8 sps:$4 sm:$0xff]   ;;  %v3342_v58 = vld [vmem:[#allocation6 + $0x120] ss:$8 sps:$4 sm:$0xff]   ;;  %vm4947_vm3 = vmmov %vm4942_vm0 }
 0x220   : > { %2219 = vmatprep.subr.bf16.mxu1 %v3251_v23  ;;  %2319 = vmatprep.subr.bf16.mxu0 %v3323_v13  ;;  %v3344_v23 = vld [vmem:[#allocation6 + $0x124] ss:$8 sps:$4 sm:$0xff]   ;;  %v3363_v13 = vld [vmem:[#allocation6 + $0x300] ss:$8 sps:$4 sm:$0xff]  }
 0x222   : > { %2895 = vmatmul.mubr.msk.bf16.vlgmr.msra.gmra.mrb[12].mxu1 %vm4943_vm9, %v4212_v47  ;;  %v3272_v47 = vld [vmem:[#allocation6 + $0x64] ss:$8 sps:$4 sm:$0xff]  }
 0x223   : > { %2220 = vmatpush1.bf16.msra.mxu1 %v3249_v4  ;;  %2320 = vmatpush1.bf16.msra.mxu0 %v3321_v55  ;;  %v4705_v59 = vpop.permute.xlu1 %1239  ;;  %v3350_v4 = vld [vmem:[#allocation6 + $0x134] ss:$8 sps:$4 sm:$0xff]  }
 0x224   : > { %2221 = vmatprep.subr.bf16.mxu1 %v3254_v60  ;;  %2321 = vmatprep.subr.bf16.mxu0 %v3329_v0  ;;  %v3348_v60 = vld [vmem:[#allocation6 + $0x130] ss:$8 sps:$4 sm:$0xff]  }
 0x225   : > { %v3369_v0 = vld [vmem:[#allocation6 + $0x310] ss:$8 sps:$4 sm:$0xff]  }
 0x227   : > { %2222 = vmatpush1.bf16.msra.mxu1 %v3252_v54  ;;  %2322 = vmatpush1.bf16.msra.mxu0 %v3327_v29  ;;  %v3356_v54 = vld [vmem:[#allocation6 + $0x144] ss:$8 sps:$4 sm:$0xff]   ;;  %v3374_v29 = vld [vmem:[#allocation6 + $0x174] ss:$8 sps:$4 sm:$0xff]  }
 0x228   : > { %2223 = vmatprep.subr.bf16.mxu1 %v3257_v34  ;;  %2323 = vmatprep.subr.bf16.mxu0 %v3335_v15  ;;  %v3375_v15 = vld [vmem:[#allocation6 + $0x320] ss:$8 sps:$4 sm:$0xff]  }
 0x22b   : > { %2224 = vmatpush1.bf16.msra.mxu1 %v3255_v38  ;;  %2324 = vmatpush1.bf16.msra.mxu0 %v3333_v44  ;;  %v3354_v38 = vld [vmem:[#allocation6 + $0x140] ss:$8 sps:$4 sm:$0xff]   ;;  %v3380_v44 = vld [vmem:[#allocation6 + $0x184] ss:$8 sps:$4 sm:$0xff]  }
 0x22c   : > { %2225 = vmatprep.subr.bf16.mxu1 %v3260_v43  ;;  %2325 = vmatprep.subr.bf16.mxu0 %v3341_v18  ;;  %v3386_v18 = vld [vmem:[#allocation6 + $0x194] ss:$8 sps:$4 sm:$0xff]  }
 0x22f   : > { %2226 = vmatpush1.bf16.msra.mxu1 %v3258_v20  ;;  %2326 = vmatpush1.bf16.msra.mxu0 %v3339_v40 }
 0x230   : > { %2227 = vmatprep.subr.bf16.mxu1 %v3263_v31  ;;  %2327 = vmatprep.subr.bf16.mxu0 %v3347_v10  ;;  %v3362_v31 = vld [vmem:[#allocation6 + $0x154] ss:$8 sps:$4 sm:$0xff]   ;;  %v3389_v10 = vld [vmem:[#allocation6 + $0x344] ss:$8 sps:$4 sm:$0xff]  }
 0x233   : > { %2228 = vmatpush1.bf16.msra.mxu1 %v3261_v52  ;;  %2328 = vmatpush1.bf16.msra.mxu0 %v3345_v56 }
 0x234   : > { %2229 = vmatprep.subr.bf16.mxu1 %v3266_v63  ;;  %2329 = vmatprep.subr.bf16.mxu0 %v3353_v25 }
 0x237   : > { %2230 = vmatpush1.bf16.msra.mxu1 %v3264_v30  ;;  %2330 = vmatpush1.bf16.msra.mxu0 %v3351_v61 }
 0x238   : > { %2231 = vmatprep.subr.bf16.mxu1 %v3272_v47  ;;  %2331 = vmatprep.subr.bf16.mxu0 %v3359_v53 }
 0x23b   : > { %2232 = vmatpush1.bf16.msra.mxu1 %v3270_v6  ;;  %2332 = vmatpush1.bf16.msra.mxu0 %v3357_v7  ;;  %v3395_v7 = vld [vmem:[#allocation6 + $0x354] ss:$8 sps:$4 sm:$0xff]  }
 0x23c   : > { %2233 = vmatprep.subr.bf16.mxu1 %v3278_v32  ;;  %2342 = vmatprep.subr.bf16.mxu0 %v3365_v9  ;;  %v3360_v32 = vld [vmem:[#allocation6 + $0x150] ss:$8 sps:$4 sm:$0xff]  }
 0x23d   : > { %v3393_v9 = vld [vmem:[#allocation6 + $0x350] ss:$8 sps:$4 sm:$0xff]  }
 0x23f   : > { %2234 = vmatpush1.bf16.msra.mxu1 %v3276_v12  ;;  %v3368_v12 = vld [vmem:[#allocation6 + $0x164] ss:$8 sps:$4 sm:$0xff]  }
 0x240   : > { %2235 = vmatprep.subr.bf16.mxu1 %v3284_v17 }
 0x243   : > { %2236 = vmatpush1.bf16.msra.mxu1 %v3282_v14  ;;  %v3371_v14 = vld [vmem:[#allocation6 + $0x314] ss:$8 sps:$4 sm:$0xff]  }
 0x244   : > { %2237 = vmatprep.subr.bf16.mxu1 %v3290_v46  ;;  %v3366_v46 = vld [vmem:[#allocation6 + $0x160] ss:$8 sps:$4 sm:$0xff]  }
 0x247   : > { %2238 = vmatpush1.bf16.msra.mxu1 %v3288_v45  ;;  %v3377_v45 = vld [vmem:[#allocation6 + $0x324] ss:$8 sps:$4 sm:$0xff]  }
 0x248   : > { %2239 = vmatprep.subr.bf16.mxu1 %v3296_v24  ;;  %v3372_v24 = vld [vmem:[#allocation6 + $0x170] ss:$8 sps:$4 sm:$0xff]  }
 0x24b   : > { %2240 = vmatpush1.bf16.msra.mxu1 %v3294_v39  ;;  %v3383_v39 = vld [vmem:[#allocation6 + $0x334] ss:$8 sps:$4 sm:$0xff]  }
 0x24c   : > { %2241 = vmatprep.subr.bf16.mxu1 %v3302_v41  ;;  %v3378_v41 = vld [vmem:[#allocation6 + $0x180] ss:$8 sps:$4 sm:$0xff]  }
 0x24f   : > { %2242 = vmatpush1.bf16.msra.mxu1 %v3300_v19 }
 0x250   : > { %2243 = vmatprep.subr.bf16.mxu1 %v3308_v16  ;;  %v3381_v16 = vld [vmem:[#allocation6 + $0x330] ss:$8 sps:$4 sm:$0xff]  }
 0x253   : > { %2244 = vmatpush1.bf16.msra.mxu1 %v3306_v27 }
 0x254   : > { %2245 = vmatprep.subr.bf16.mxu1 %v3314_v22  ;;  %v3384_v22 = vld [vmem:[#allocation6 + $0x190] ss:$8 sps:$4 sm:$0xff]  }
 0x257   : > { %2246 = vmatpush1.bf16.msra.mxu1 %v3312_v62  ;;  %v3392_v62 = vld [vmem:[#allocation6 + $0x1a4] ss:$8 sps:$4 sm:$0xff]  }
 0x258   : > { %2247 = vmatprep.subr.bf16.mxu1 %v3320_v21  ;;  %v3387_v21 = vld [vmem:[#allocation6 + $0x340] ss:$8 sps:$4 sm:$0xff]  }
 0x25b   : > { %2248 = vmatpush1.bf16.msra.mxu1 %v3318_v49  ;;  %v3390_v49 = vld [vmem:[#allocation6 + $0x1a0] ss:$8 sps:$4 sm:$0xff]  }
 0x25c   : > { %2249 = vmatprep.subr.bf16.mxu1 %v3326_v1  ;;  %v3398_v1 = vld [vmem:[#allocation6 + $0x1b4] ss:$8 sps:$4 sm:$0xff]  }
 0x25f   : > { %2250 = vmatpush1.bf16.msra.mxu1 %v3324_v26  ;;  %v3401_v26 = vld [vmem:[#allocation6 + $0x364] ss:$8 sps:$4 sm:$0xff]  }
 0x260   : > { %2260 = vmatprep.subr.bf16.mxu1 %v3332_v48  ;;  %v3396_v48 = vld [vmem:[#allocation6 + $0x1b0] ss:$8 sps:$4 sm:$0xff]  }
 0x2ba   : > { %v1305_v5 = vpop.f32.mrb[8].mxu0 }
 0x2bb   : > { %v1307_v36 = vpop.f32.mrb[9].mxu0  ;;  %v1306_v33 = vadd.f32 %v1305_v5, %v4705_v59  ;;  %v3404_v5 = vld [vmem:[#allocation6 + $0x1c4] ss:$8 sps:$4 sm:$0xff]  }
 0x2bc   : > { %v1308_v42 = vadd.f32 %v1307_v36, %v4705_v59  ;;  %v1309_v2 = vpop.f32.mrb[10].mxu0  ;;  %v3399_v36 = vld [vmem:[#allocation6 + $0x360] ss:$8 sps:$4 sm:$0xff]  }
 0x2bd   : > { %v1310_v35 = vpop.f32.mrb[11].mxu0  ;;  %v1435_v8 = vmax.f32 %v1306_v33, 0.0  ;;  %v3407_v33 = vld [vmem:[#allocation6 + $0x374] ss:$8 sps:$4 sm:$0xff]  }
 0x2be   : > { %v1436_v57 = vmax.f32 %v1308_v42, 0.0  ;;  %v3402_v42 = vld [vmem:[#allocation6 + $0x1c0] ss:$8 sps:$4 sm:$0xff]   ;;  %v3410_v2 = vld [vmem:[#allocation6 + $0x1d4] ss:$8 sps:$4 sm:$0xff]  }
 0x2bf   : > { %v1443_v37 = vpack.c.bf16 %v1435_v8, %v1435_v8  ;;  %v3405_v35 = vld [vmem:[#allocation6 + $0x370] ss:$8 sps:$4 sm:$0xff]   ;;  %v3413_v8 = vld [vmem:[#allocation6 + $0x384] ss:$8 sps:$4 sm:$0xff]  }
 0x2c0   : > { %v1444_v11 = vpack.c.bf16 %v1436_v57, %v1436_v57  ;;  %v3408_v57 = vld [vmem:[#allocation6 + $0x1d0] ss:$8 sps:$4 sm:$0xff]  }
 0x2c2   : > { %2251 = vmatprep.mubr.bf16.mxu1 %v1444_v11  ;;  %v3416_v11 = vld [vmem:[#allocation6 + $0x1e4] ss:$8 sps:$4 sm:$0xff]  }
 0x2c3   : > { %2252 = vmatmul.mubr.bf16.vlgmr.msra.gmra.mrb[16].mxu1 %v1443_v37 }
 0x2c4   : > { %2261 = vmatpush1.bf16.msra.mxu1 %v3330_v28 }
 0x2c5   : > { %2262 = vmatprep.subr.bf16.mxu1 %v3338_v51  ;;  %v3411_v51 = vld [vmem:[#allocation6 + $0x380] ss:$8 sps:$4 sm:$0xff]  }
 0x2c8   : > { %2263 = vmatpush1.bf16.msra.mxu1 %v3336_v50 }
 0x2c9   : > { %2264 = vmatprep.subr.bf16.mxu1 %v3344_v23  ;;  %v3419_v23 = vld [vmem:[#allocation6 + $0x394] ss:$8 sps:$4 sm:$0xff]  }
 0x2cc   : > { %2265 = vmatpush1.bf16.msra.mxu1 %v3342_v58 }
 0x2cd   : > { %2266 = vmatprep.subr.bf16.mxu1 %v3350_v4  ;;  %v3414_v4 = vld [vmem:[#allocation6 + $0x1e0] ss:$8 sps:$4 sm:$0xff]  }
 0x2d0   : > { %2267 = vmatpush1.bf16.msra.mxu1 %v3348_v60 }
 0x2d1   : > { %v1387_v34 = vpop.f32.mrb[12].mxu0  ;;  %2268 = vmatprep.subr.bf16.mxu1 %v3356_v54 }
 0x2d2   : > { %v1388_v43 = vadd.f32 %v1387_v34, %v4705_v59  ;;  %v1389_v20 = vpop.f32.mrb[13].mxu0 }
 0x2d3   : > { %v1390_v52 = vadd.f32 %v1389_v20, %v4705_v59  ;;  %v1391_v63 = vpop.f32.mrb[14].mxu0 }
 0x2d4   : > { %v1439_v30 = vmax.f32 %v1388_v43, 0.0  ;;  %v1392_v47 = vpop.f32.mrb[15].mxu0  ;;  %2269 = vmatpush1.bf16.msra.mxu1 %v3354_v38  ;;  %v3422_v38 = vld [vmem:[#allocation6 + $0x1f4] ss:$8 sps:$4 sm:$0xff]   ;;  %v3417_v43 = vld [vmem:[#allocation6 + $0x390] ss:$8 sps:$4 sm:$0xff]  }
 0x2d5   : > { %v1440_v6 = vmax.f32 %v1390_v52, 0.0  ;;  %2270 = vmatprep.subr.bf16.mxu1 %v3362_v31  ;;  %v3425_v31 = vld [vmem:[#allocation6 + $0x3a4] ss:$8 sps:$4 sm:$0xff]   ;;  %v3420_v52 = vld [vmem:[#allocation6 + $0x1f0] ss:$8 sps:$4 sm:$0xff]  }
 0x2d6   : > { %v1447_v55 = vpack.c.bf16 %v1439_v30, %v1439_v30  ;;  %v3423_v30 = vld [vmem:[#allocation6 + $0x3a0] ss:$8 sps:$4 sm:$0xff]   ;;  %v3428_v47 = vld [vmem:[#allocation6 + $0x3b4] ss:$8 sps:$4 sm:$0xff]  }
 0x2d7   : > { %v1448_v17 = vpack.c.bf16 %v1440_v6, %v1440_v6 }
 0x2d8   : > { %2271 = vmatpush1.bf16.msra.mxu1 %v3360_v32  ;;  %v3426_v32 = vld [vmem:[#allocation6 + $0x3b0] ss:$8 sps:$4 sm:$0xff]  }
 0x2d9   : > { %2333 = vmatprep.mubr.bf16.mxu0 %v1448_v17  ;;  %2272 = vmatprep.subr.bf16.mxu1 %v3368_v12  ;;  %v3431_v12 = vld [vmem:[#allocation6 + $0x3c4] ss:$8 sps:$4 sm:$0xff]   ;;  %v3429_v17 = vld [vmem:[#allocation6 + $0x3c0] ss:$8 sps:$4 sm:$0xff]  }
 0x2da   : > { %2334 = vmatmul.mubr.bf16.vlgmr.msra.gmra.mrb[16].mxu0 %v1447_v55  ;;  %v3432_v55 = vld [vmem:[#allocation6 + $0x3d0] ss:$8 sps:$4 sm:$0xff]  }
 0x2db   : > { %2343 = vmatpush1.bf16.msra.mxu0 %v3363_v13  ;;  %v3434_v13 = vld [vmem:[#allocation6 + $0x3d4] ss:$8 sps:$4 sm:$0xff]  }
 0x2dc   : > { %2344 = vmatprep.subr.bf16.mxu0 %v3371_v14  ;;  %2273 = vmatpush1.bf16.msra.mxu1 %v3366_v46  ;;  %v3437_v14 = vld [vmem:[#allocation6 + $0x3e4] ss:$8 sps:$4 sm:$0xff]   ;;  %v3435_v46 = vld [vmem:[#allocation6 + $0x3e0] ss:$8 sps:$4 sm:$0xff]  }
 0x2dd   : > { %2274 = vmatprep.subr.bf16.mxu1 %v3374_v29 }
 0x2df   : > { %2345 = vmatpush1.bf16.msra.mxu0 %v3369_v0  ;;  %v3440_v0 = vld [vmem:[#allocation6 + $0x3f4] ss:$8 sps:$4 sm:$0xff]  }
 0x2e0   : > { %2346 = vmatprep.subr.bf16.mxu0 %v3377_v45  ;;  %2275 = vmatpush1.bf16.msra.mxu1 %v3372_v24  ;;  %v3438_v45 = vld [vmem:[#allocation6 + $0x3f0] ss:$8 sps:$4 sm:$0xff]  }
 0x2e1   : > { %v1346_v40 = vpop.f32.mrb[8].mxu1  ;;  %2276 = vmatprep.subr.bf16.mxu1 %v3380_v44 }
 0x2e2   : > { %v1348_v19 = vpop.f32.mrb[9].mxu1  ;;  %v1347_v54 = vadd.f32 %v1346_v40, %v4705_v59 }
 0x2e3   : > { %2347 = vmatpush1.bf16.msra.mxu0 %v3375_v15  ;;  %v1349_v56 = vadd.f32 %v1348_v19, %v4705_v59  ;;  %v1350_v27 = vpop.f32.mrb[10].mxu1  ;;  %v3443_v15 = vld [vmem:[%s3803_s16 + $0x4] ss:$8 sps:$4 sm:$0xff]  }
 0x2e4   : > { %2348 = vmatprep.subr.bf16.mxu0 %v3383_v39  ;;  %2277 = vmatpush1.bf16.msra.mxu1 %v3378_v41  ;;  %v1351_v25 = vpop.f32.mrb[11].mxu1  ;;  %v1437_v63 = vmax.f32 %v1347_v54, 0.0  ;;  %v3441_v39 = vld [vmem:[%s3803_s16] ss:$8 sps:$4 sm:$0xff]  }
 0x2e5   : > { %v1438_v61 = vmax.f32 %v1349_v56, 0.0  ;;  %2278 = vmatprep.subr.bf16.mxu1 %v3386_v18  ;;  %v3445_v41 = vld [vmem:[%s4795_s7] sm:$0xff]  }
 0x2e6   : > { %v1445_v6 = vpack.c.bf16 %v1437_v63, %v1437_v63 }
 0x2e7   : > { %2349 = vmatpush1.bf16.msra.mxu0 %v3381_v16  ;;  %v1446_v53 = vpack.c.bf16 %v1438_v61, %v1438_v61 }
 0x2e8   : > { %2350 = vmatprep.subr.bf16.mxu0 %v3389_v10  ;;  %2279 = vmatpush1.bf16.msra.mxu1 %v3384_v22 }
 0x2e9   : > { %2292 = vmatprep.mubr.bf16.mxu1 %v1446_v53  ;;  %2280 = vmatprep.subr.bf16.mxu1 %v3392_v62 }
 0x2eb   : > { %2351 = vmatpush1.bf16.msra.mxu0 %v3387_v21 }
 0x2ec   : > { %2352 = vmatprep.subr.bf16.mxu0 %v3395_v7  ;;  %2281 = vmatpush1.bf16.msra.mxu1 %v3390_v49  ;;  %v3444_v7 = vld [vmem:[%s4793_s5] sm:$0xff]   ;;  %v3446_v49 = vld [vmem:[%s4793_s5 + $0x8] sm:$0xff]  }
 0x2ed   : > { %2282 = vmatprep.subr.bf16.mxu1 %v3398_v1 }
 0x2ef   : > { %2353 = vmatpush1.bf16.msra.mxu0 %v3393_v9 }
 0x2f0   : > { %2354 = vmatprep.subr.bf16.mxu0 %v3401_v26  ;;  %2283 = vmatpush1.bf16.msra.mxu1 %v3396_v48 }
 0x2f1   : > { %2284 = vmatprep.subr.bf16.mxu1 %v3404_v5 }
 0x2f3   : > { %2355 = vmatpush1.bf16.msra.mxu0 %v3399_v36 }
 0x2f4   : > { %2356 = vmatprep.subr.bf16.mxu0 %v3407_v33  ;;  %2285 = vmatpush1.bf16.msra.mxu1 %v3402_v42 }
 0x2f5   : > { %v1428_v37 = vpop.f32.mrb[12].mxu1  ;;  %2286 = vmatprep.subr.bf16.mxu1 %v3410_v2  ;;  %v2396_v2 = vpop.permute.xlu0 %2395 }
 0x2f6   : > { %v1430_v28 = vpop.f32.mrb[13].mxu1  ;;  %v1429_v29 = vadd.f32 %v1428_v37, %v4705_v59 }
 0x2f7   : > { %2357 = vmatpush1.bf16.msra.mxu0 %v3405_v35  ;;  %v1431_v50 = vadd.f32 %v1430_v28, %v4705_v59  ;;  %v1432_v58 = vpop.f32.mrb[14].mxu1  ;;  %v3447_v59 = vld [vmem:[%s4795_s7 + $0x8] sm:$0xff]   ;;  %v2401_v35 = vpop.permute.xlu1 %2400 }
 0x2f8   : > { %2358 = vmatprep.subr.bf16.mxu0 %v3413_v8  ;;  %2287 = vmatpush1.bf16.msra.mxu1 %v3408_v57  ;;  %v1433_v60 = vpop.f32.mrb[15].mxu1  ;;  %v1441_v24 = vmax.f32 %v1429_v29, 0.0 }
 0x2f9   : > { %v1442_v34 = vmax.f32 %v1431_v50, 0.0  ;;  %2288 = vmatprep.subr.bf16.mxu1 %v3416_v11  ;;  %v2406_v8 = vpop.permute.xlu0 %2405 }
 0x2fa   : > { %v1449_v44 = vpack.c.bf16 %v1441_v24, %v1441_v24 }
 0x2fb   : > { %2359 = vmatpush1.bf16.msra.mxu0 %v3411_v51  ;;  %v1450_v20 = vpack.c.bf16 %v1442_v34, %v1442_v34  ;;  %v2411_v57 = vpop.permute.xlu1 %2410 }
 0x2fc   : > { %2360 = vmatprep.subr.bf16.mxu0 %v3419_v23  ;;  %2289 = vmatpush1.bf16.msra.mxu1 %v3414_v4 }
 0x2fd   : > { %2374 = vmatprep.mubr.bf16.mxu0 %v1450_v20  ;;  %2290 = vmatprep.subr.bf16.mxu1 %v3422_v38  ;;  %v2589_v4 = vpop.permute.xlu0 %2588 }
 0x2ff   : > { %2361 = vmatpush1.bf16.msra.mxu0 %v3417_v43  ;;  %v2594_v43 = vpop.permute.xlu1 %2593 }
 0x300   : > { %2362 = vmatprep.subr.bf16.mxu0 %v3425_v31  ;;  %2291 = vmatpush1.bf16.msra.mxu1 %v3420_v52 }
 0x301   : > { %2521 = vmatprep.subr.bf16.mxu1 %v3443_v15  ;;  %v2599_v24 = vpop.permute.xlu0 %2598 }
 0x303   : > { %2363 = vmatpush1.bf16.msra.mxu0 %v3423_v30  ;;  %2293 = vmatmul.mubr.bf16.vlgmr.msra.gmra.mrb[16].mxu1 %v1445_v6 }
 0x304   : > { %2364 = vmatprep.subr.bf16.mxu0 %v3428_v47  ;;  %2553 = vmatprep.mubr.bf16.mxu1 %v4924_v3 }
 0x305   : > { %2522 = vmatpush1.bf16.msra.mxu1 %v3441_v39 }
 0x307   : > { %2365 = vmatpush1.bf16.msra.mxu0 %v3426_v32 }
 0x308   : > { %2366 = vmatprep.subr.bf16.mxu0 %v3431_v12 }
 0x30b   : > { %2367 = vmatpush1.bf16.msra.mxu0 %v3429_v17  ;;  %3033 = vmatmul.mubr.msk.bf16.vlgmr.msra.gmra.mrb[20].mxu1 %vm4944_vm4, %v3445_v41 }
 0x30c   : > { %2368 = vmatprep.subr.bf16.mxu0 %v3434_v13  ;;  %2563 = vmatprep.mubr.bf16.mxu1 %v4924_v3 }
 0x30f   : > { %2369 = vmatpush1.bf16.msra.mxu0 %v3432_v55 }
 0x310   : > { %2370 = vmatprep.subr.bf16.mxu0 %v3437_v14 }
 0x313   : > { %2371 = vmatpush1.bf16.msra.mxu0 %v3435_v46  ;;  %3034 = vmatmul.mubr.msk.bf16.gmra.mrb[24].mxu1 %vm4945_vm12, %v3447_v59 }
 0x314   : > { %2372 = vmatprep.subr.bf16.mxu0 %v3440_v0 }
 0x317   : > { %2373 = vmatpush1.bf16.msra.mxu0 %v3438_v45 }
 0x31a   : > { %2375 = vmatmul.mubr.bf16.vlgmr.msra.gmra.mrb[16].mxu0 %v1449_v44 }
 0x31b   : > { %2468 = vmatprep.mubr.bf16.mxu0 %v4924_v3 }
 0x3d6   : > { %v2294_v40 = vpop.f32.mrb[16].mxu1 }
 0x3d7   : > { %v2296_v18 = vpop.f32.mrb[17].mxu1 }
 0x3d8   : > { %v2298_v19 = vpop.f32.mrb[18].mxu1 }
 0x3d9   : > { %v2299_v16 = vpop.f32.mrb[19].mxu1 }
 0x3de   : > { %v2555_v1 = vpop.f32.mrb[20].mxu1 }
 0x3df   : > { %v2557_v9 = vpop.f32.mrb[21].mxu1 }
 0x3e0   : > { %v2559_v26 = vpop.f32.mrb[22].mxu1 }
 0x3e1   : > { %v2561_v48 = vpop.f32.mrb[23].mxu1 }
 0x3e6   : > { %v2565_v5 = vpop.f32.mrb[24].mxu1 }
 0x3e7   : > { %v2567_v36 = vpop.f32.mrb[25].mxu1 }
 0x3e8   : > { %v2569_v33 = vpop.f32.mrb[26].mxu1 }
 0x3e9   : > { %v2571_v42 = vpop.f32.mrb[27].mxu1 }
 0x3ed   : > { %v2376_v56 = vpop.f32.mrb[16].mxu0 }
 0x3ee   : > { %v3051_v10 = vadd.f32 %v2376_v56, %v2294_v40  ;;  %v2378_v27 = vpop.f32.mrb[17].mxu0  ;;  %v2604_v40 = vpop.permute.xlu1 %2603 }
 0x3ef   : > { %v3052_v22 = vadd.f32 %v2378_v27, %v2296_v18  ;;  %v2380_v25 = vpop.f32.mrb[18].mxu0 }
 0x3f0   : > { %v2383_v61 = vpack.c.bf16 %v3051_v10, %v3051_v10  ;;  %v2381_v62 = vpop.f32.mrb[19].mxu0 }
 0x3f1   : > { %v2384_v21 = vpack.c.bf16 %v3052_v22, %v3052_v22 }
 0x3f2   : > { %v2431_v53 = vsel %vm4946_vm15, %v2383_v61, 0 }
 0x3f3   : > { %3026 = vmatprep.subr.msk.bf16.mxu0 %vm4947_vm3, %v2384_v21 }
 0x3f4   : > { %2437 = vmatpush1.bf16.msra.mxu0 %v2431_v53 }
 0x3f7   : > { %3027 = vmatmul.mubr.msk.bf16.vlgmr.msra.gmra.mrb[20].mxu0 %vm2423_vm14, %v3444_v7 }
 0x3f8   : > { %2478 = vmatprep.mubr.bf16.mxu0 %v4924_v3 }
 0x3ff   : > { %3028 = vmatmul.mubr.msk.bf16.gmra.mrb[24].mxu0 %vm2423_vm14, %v3446_v49 }
 0x4ca   : > { %v2470_v37 = vpop.f32.mrb[20].mxu0 }
 0x4cb   : > { %v2471_v3 = vadd.f32 %v2470_v37, %v2396_v2  ;;  %v2472_v11 = vpop.f32.mrb[21].mxu0 }
 0x4cc   : > { %v2473_v28 = vadd.f32 %v2472_v11, %v2396_v2  ;;  %v2474_v51 = vpop.f32.mrb[22].mxu0 }
 0x4cd   : > { %v2475_v50 = vadd.f32 %v2474_v51, %v2401_v35  ;;  %v2574_v23 = vadd.f32 %v2555_v1, %v2471_v3  ;;  %v2476_v58 = vpop.f32.mrb[23].mxu0 }
 0x4ce   : > { %v2477_v60 = vadd.f32 %v2476_v58, %v2401_v35  ;;  %v2575_v54 = vadd.f32 %v2557_v9, %v2473_v28 }
 0x4cf   : > { %v2606_v34 = vadd.f32 %v2589_v4, %v2574_v23  ;;  %v2576_v38 = vadd.f32 %v2559_v26, %v2475_v50 }
 0x4d0   : > { %v2607_v20 = vadd.f32 %v2589_v4, %v2575_v54  ;;  %v2577_v31 = vadd.f32 %v2561_v48, %v2477_v60 }
 0x4d1   : > { %v2614_v52 = vmax.f32 %v2606_v34, 0.0  ;;  %v2608_v63 = vadd.f32 %v2594_v43, %v2576_v38 }
 0x4d2   : > { %v2615_v30 = vmax.f32 %v2607_v20, 0.0  ;;  %v2609_v47 = vadd.f32 %v2594_v43, %v2577_v31  ;;  %v2480_v6 = vpop.f32.mrb[24].mxu0 }
 0x4d3   : > { %v2616_v32 = vmax.f32 %v2608_v63, 0.0  ;;  %v2481_v12 = vadd.f32 %v2480_v6, %v2406_v8  ;;  %v2482_v17 = vpop.f32.mrb[25].mxu0 }
 0x4d4   : > { %v3046_v13 = vpack.c.bf16 %v2615_v30, %v2614_v52  ;;  %v2617_v55 = vmax.f32 %v2609_v47, 0.0  ;;  %v2483_v14 = vadd.f32 %v2482_v17, %v2406_v8  ;;  %v2484_v46 = vpop.f32.mrb[26].mxu0 }
 0x4d5   : > { %v2485_v29 = vadd.f32 %v2484_v46, %v2411_v57  ;;  %v2578_v0 = vadd.f32 %v2565_v5, %v2481_v12  ;;  %v2486_v45 = vpop.f32.mrb[27].mxu0 }
 0x4d6   : > { %2646 = vst [vmem:[%s478_s26] sm:$0xff] %v3046_v13  ;;  %v3047_v44 = vpack.c.bf16 %v2617_v55, %v2616_v32  ;;  %v2487_v15 = vadd.f32 %v2486_v45, %v2411_v57  ;;  %v2579_v39 = vadd.f32 %v2567_v36, %v2483_v14 }
 0x4d7   : > { %v2610_v41 = vadd.f32 %v2599_v24, %v2578_v0  ;;  %v2580_v59 = vadd.f32 %v2569_v33, %v2485_v29 }
 0x4d8   : > { %2647 = vst [vmem:[%s478_s26 + $0x8] sm:$0xff] %v3047_v44  ;;  %v2611_v18 = vadd.f32 %v2599_v24, %v2579_v39  ;;  %v2581_v19 = vadd.f32 %v2571_v42, %v2487_v15 }
 0x4d9   : > { %v2618_v16 = vmax.f32 %v2610_v41, 0.0  ;;  %v2612_v56 = vadd.f32 %v2604_v40, %v2580_v59 }
 0x4da   : > { %v2619_v10 = vmax.f32 %v2611_v18, 0.0  ;;  %v2613_v27 = vadd.f32 %v2604_v40, %v2581_v19 }
 0x4db   : > { %v2620_v22 = vmax.f32 %v2612_v56, 0.0 }
 0x4dc   : > { %v3048_v25 = vpack.c.bf16 %v2619_v10, %v2618_v16  ;;  %v2621_v61 = vmax.f32 %v2613_v27, 0.0 }
 0x4de   : > { %2648 = vst [vmem:[%s478_s26 + $0x10] sm:$0xff] %v3048_v25  ;;  %v3049_v62 = vpack.c.bf16 %v2621_v61, %v2620_v22 }
 0x4e0   : > { %2649 = vst [vmem:[%s478_s26 + $0x18] sm:$0xff] %v3049_v62 }
 0x4e1   : > { %3517 = shalt.err (!%p3514_p12)
}
 0x4e2   : > { %s3518_s16 = scalar_lea.hbm %s4744_s13, 512  ;;  %s3522_s27 = scalar_lea.hbm %s4799_s11, 1024 }
 0x4e3   : > { %p3519_p13 = scmp.ne.s32.totalorder %s4744_s13, %s3518_s16  ;;  %p3523_p2 = scmp.lt.u32.totalorder %s4744_s13, %s4799_s11 }
 0x4e4   : > { %p3524_p3 = scmp.lt.u32.totalorder %s3522_s27, %s3518_s16  ;;  %p3526_p9 = scmp.lt.u32.totalorder %s3518_s16, %s4744_s13 }
 0x4e5   : > { %p3520_p11 = pnand %p3519_p13, %p4948_p8 }
 0x4e6   : > { %p3525_p7 = por %p3524_p3, %p3523_p2 }
 0x4e7   : > { %p3521_p5 = pneg %p3520_p11 }
 0x4e8   : > { %p3527_p10 = por %p3526_p9, %p3525_p7 }
 0x4ea   : > { %p3528_p1 = pnand %p3527_p10, %p3521_p5 }
 0x4ec   : > { %3531 = shalt.err (!%p3528_p1)
}
 0x4ed   : > { %s3594_s28 = smov 128   ;;  %s3595_s12 = smov 256  }
 0x4ee   : > { %s3596_s22 = smov 8  }
 0x4ef   : > { %3083 = dma.vmem_to_hbm [thread:$0]  (%p4948_p8), %s4739_s0, 512, %s4744_s13, %s2651_s30, %s3594_s28, %s3595_s12, %s3596_s22  }
 0x4f0 PF: > { %s4949_s15 = sld [smem:[#allocation12_spill]]  ;;  %s4950_s21 = sld [smem:[#allocation15_spill]] }
 0x4f6   : > { %s2679_s24 = sand.u32 1, %s4949_s15   ;;  %p4951_p4 = scmp.ne.s32.totalorder %s4950_s21, 0 }
 0x4f7   : > { %s2680_s10 = scalar_lea.sflag [#allocation4], %s2679_s24 }
 0x4f8   : > { %p3090_p6 = pnand %p2768_p0, %p4951_p4 }
 0x4fa   : > { %3557 = dma.done.wait (!%p3090_p6), %s2680_s10, 512  }
 0x4fb   : > { %3559 = vsyncadd (!%p3090_p6), %s2680_s10, 4294966784  ;;  %s4952_s20 = sld [smem:[#allocation13_spill]]  ;;  %s4953_s16 = sld [smem:[#allocation14_spill]] }
 0x4fc   : > { %s4954_s17 = smov %s3566_s18  ;;  %s4955_s18 = smov %s3570_s19 }
 0x501   : > { %p25_p12 = scmp.ge.s32.totalorder %s4952_s20, 4   ;;  %s4956_s19 = smov %s4953_s16 }
 0x503   :  { %27 = sbr.rel (!%p25_p12) target bundleno = 9 (0x9), region = 159 }
 0x50a   :  { %2685 = vsyncpa [#allocation3], 1 }
 0x50b   :  { %2687 = vsyncpa [#allocation3 + $0x1], 1 }
 0x50c   :  { %2688 = vsyncpa [#allocation7], 1 }
 0x50d   :  { %2689 = vsyncpa [#allocation4], 1 }
 0x50e   :  { %2691 = vsyncpa [#allocation4 + $0x1], 1 }

</bundles_post_ra>
